<compile_context>
chip_gen: v7x
topology: tpu7x:2x2x1
jax: 0.10.0
libtpu: 0.0.40
codegen_flags: <defaults>
</compile_context>

<pallas_src>
import functools

import numpy as np

import jax
import jax.numpy as jnp
from jax.experimental import pallas as pl
from jax.experimental.pallas import tpu as pltpu


# ----------------------------------------------------------------------------
# small helpers
# ----------------------------------------------------------------------------
def _round_up(x, m):
    return ((x + m - 1) // m) * m


def _vmem_capacity_bytes():
    try:
        return int(pltpu.get_tpu_info().vmem_capacity_bytes)
    except Exception:
        return 64 * 1024 * 1024        # conservative default (v7x per-TensorCore size)


def _num_tensorcores():
    try:
        kind = jax.devices()[0].device_kind.lower()
        if ("v7" in kind) or ("v4" in kind) or ("v5p" in kind):
            return 2
    except Exception:
        pass
    return 1


def _pick_bt(B, H, W, C, KH, KW, HP, cdt_bytes, vmem_cap, num_tc):
    """Largest batch tile under a chip-aware VMEM budget.  The grid is only forced to
    >=2 steps on multi-TensorCore chips (on 1-TC chips the grid is a serial loop, so
    splitting only adds per-step overhead)."""
    ph, pw = (KH - 1) // 2, (KW - 1) // 2
    Hp = H + 2 * ph
    WpC = (W + 2 * pw) * C
    resident = (KH * WpC * W * HP * cdt_bytes      # block-Toeplitz conv weights
                + HP * 128 * 4                     # classifier weight (approx)
                + 64 * 1024)                       # small constants / slack
    per_b = (2 * H * W * C * 4                                     # 2x input block
             + _round_up(Hp, 8) * _round_up(WpC, 128) * cdt_bytes  # halo scratch
             + 2 * H * W * HP * 4                                  # f32 conv act + spill slack
             + 2 * H * HP * 4                                      # pooled / feats
             + 4 * 128 * 4)
    budget = int(0.6 * vmem_cap) - resident
    bt = max(1, min(B, budget // max(per_b, 1)))
    if num_tc >= 2 and bt >= B and B >= 16:
        bt = B // 2                                # give the 'parallel' axis >=2 steps
    # keep the (Bt, 128) output blocks tile-aligned: Bt == B or Bt % 8 == 0,
    # and Bt must evenly divide B.
    while bt > 1 and (B % bt != 0 or (bt != B and bt % 8 != 0)):
        bt -= 1
    return max(1, bt)


# ----------------------------------------------------------------------------
# Fused kernel: halo + (folded-normalize) conv as block-Toeplitz matmuls
#               + bias + ReLU + global average pool + Linear classifier
# ----------------------------------------------------------------------------
def _fused_kernel(x_ref, wbig_ref, bf_ref, fcw_ref, fcb_ref, fill_ref,
                  y_ref, f_ref, xp_ref, *, H, W, C, KH, KW, HP, inv_hw):
    # x_ref    : [Bt, H, W*C]     raw images, (W, C) collapsed into lanes (f32)
    # wbig_ref : [KH, WpC, W*HP]  block-Toeplitz, normalization-folded conv weights
    # bf_ref   : [1, HP]          folded conv bias (f32, zero-padded to HP)
    # fcw_ref  : [HP, CP]         classifier weight (f32, zero-padded)
    # fcb_ref  : [1, CP]          classifier bias (f32, zero-padded)
    # fill_ref : [1, 1, WpC]      per-channel mean tiled across a padded row
    # y_ref    : [Bt, CP]         logits out  (lane-dense, multiple of 128)
    # f_ref    : [Bt, HP]         pooled features out (lane-dense, multiple of 128)
    # xp_ref   : [Bt, Hp, WpC]    VMEM scratch: haloed image rows (compute dtype)
    Bt = x_ref.shape[0]
    ph, pw = (KH - 1) // 2, (KW - 1) // 2
    WC = W * C
    WpC = (W + 2 * pw) * C
    cdt = xp_ref.dtype

    # 1) halo.  Only the 1-pixel border is (re)written each step (previously the full
    #    buffer was rebroadcast and the interior written twice).  It is written every
    #    step rather than hoisted under pl.when(program_id == 0) because the 'parallel'
    #    batch axis may be sharded across TensorCores: each core has its own scratch
    #    and only one of them ever sees program_id == 0.
    fill = fill_ref[...]
    if ph:
        xp_ref[:, :ph, :] = jnp.broadcast_to(fill, (Bt, ph, WpC))
        xp_ref[:, ph + H:, :] = jnp.broadcast_to(fill, (Bt, ph, WpC))
    if pw:
        xp_ref[:, ph:ph + H, :pw * C] = jnp.broadcast_to(
            fill[:, :, :pw * C], (Bt, H, pw * C))
        xp_ref[:, ph:ph + H, pw * C + WC:] = jnp.broadcast_to(
            fill[:, :, pw * C + WC:], (Bt, H, pw * C))
    # interior: raw image (the (x - mean)/std preprocess is folded into the weights,
    # and the `mean` border acts as the zero-padding of the normalized image).
    xp_ref[:, ph:ph + H, pw * C:pw * C + WC] = x_ref[...].astype(cdt)

    # 2) conv: KH lane-dense matmuls against the block-Toeplitz weights.
    #    K = padded-row width, N = W*HP (HP a multiple of 128) -> no im2col scratch and
    #    no per-tap lane-offset stores; the kx/c gather lives in the weight layout.
    acc = None
    for ky in range(KH):
        band = xp_ref[:, ky:ky + H, :].reshape(Bt * H, WpC)
        part = jnp.dot(band, wbig_ref[ky], preferred_element_type=jnp.float32)
        acc = part if acc is None else acc + part            # [Bt*H, W*HP] f32

    # 3) bias + ReLU + average pool over W (f32 VPU math).  Each x-block is exactly
    #    HP (a multiple of 128) lanes, so the slices are whole lane-groups.
    bias = bf_ref[...]                                        # [1, HP]
    pooled = None
    for x in range(W):
        t = jnp.maximum(acc[:, x * HP:(x + 1) * HP] + bias, 0.0)
        pooled = t if pooled is None else pooled + t          # [Bt*H, HP]
    feats = pooled.reshape(Bt, H, HP).sum(axis=1) * inv_hw    # [Bt, HP] f32
    f_ref[...] = feats.astype(f_ref.dtype)

    # 4) fused classifier epilogue (lane-dense [Bt, CP] store).
    y_ref[...] = (jnp.dot(feats, fcw_ref[...], preferred_element_type=jnp.float32)
                  + fcb_ref[...]).astype(y_ref.dtype)


def fused_forward(x2d, wbig, b_pad, fcw_pad, fcb_pad, fill, *, H, W, C, KH, KW, HP, CP):
    B = x2d.shape[0]
    cdt = wbig.dtype
    cdt_bytes = jnp.dtype(cdt).itemsize

    vmem_cap = _vmem_capacity_bytes()
    num_tc = _num_tensorcores()
    Bt = _pick_bt(B, H, W, C, KH, KW, HP, cdt_bytes, vmem_cap, num_tc)

    ph, pw = (KH - 1) // 2, (KW - 1) // 2
    Hp = H + 2 * ph
    WpC = (W + 2 * pw) * C
    NW = W * HP

    kernel = functools.partial(_fused_kernel, H=H, W=W, C=C, KH=KH, KW=KW,
                               HP=HP, inv_hw=1.0 / float(H * W))

    vmem_limit = max(32 * 1024 * 1024, min(int(vmem_cap * 3 // 4), 96 * 1024 * 1024))

    y_pad, f_pad = pl.pallas_call(
        kernel,
        out_shape=(
            jax.ShapeDtypeStruct((B, CP), jnp.float32),
            jax.ShapeDtypeStruct((B, HP), jnp.float32),
        ),
        grid=(B // Bt,),
        in_specs=[
            pl.BlockSpec((Bt, H, W * C), lambda b: (b, 0, 0)),   # images
            pl.BlockSpec((KH, WpC, NW), lambda b: (0, 0, 0)),    # Toeplitz conv weights
            pl.BlockSpec((1, HP), lambda b: (0, 0)),             # folded conv bias
            pl.BlockSpec((HP, CP), lambda b: (0, 0)),            # classifier weight
            pl.BlockSpec((1, CP), lambda b: (0, 0)),             # classifier bias
            pl.BlockSpec((1, 1, WpC), lambda b: (0, 0, 0)),      # halo fill pattern
        ],
        out_specs=(
            pl.BlockSpec((Bt, CP), lambda b: (b, 0)),
            pl.BlockSpec((Bt, HP), lambda b: (b, 0)),
        ),
        scratch_shapes=[pltpu.VMEM((Bt, Hp, WpC), cdt)],
        compiler_params=pltpu.CompilerParams(
            dimension_semantics=("parallel",),
            vmem_limit_bytes=vmem_limit,
        ),
    )(x2d, wbig, b_pad, fcw_pad, fcb_pad, fill)
    return y_pad, f_pad


# ----------------------------------------------------------------------------
# ClassificationModel (JAX/Pallas version of the PyTorch wrapper)
# ----------------------------------------------------------------------------
class ClassificationModel:
    def __init__(self, num_classes, params, compute_dtype=jnp.bfloat16):
        self.num_classes = num_classes
        self.compute_dtype = compute_dtype

        mean = np.asarray(jax.device_get(params["mean"]), np.float32).reshape(-1)
        std = np.asarray(jax.device_get(params["std"]), np.float32).reshape(-1)
        conv_w = np.asarray(jax.device_get(params["conv_w"]), np.float32)
        conv_b = np.asarray(jax.device_get(params["conv_b"]), np.float32)
        fc_w = np.asarray(jax.device_get(params["fc_w"]), np.float32)
        fc_b = np.asarray(jax.device_get(params["fc_b"]), np.float32)

        KH, KW, C, hidden = conv_w.shape
        # TODO(synk): even kernel sizes (asymmetric SAME padding) are not supported.
        assert KH % 2 == 1 and KW % 2 == 1, "SAME-padding fold assumes odd kernel sizes"

        # Fold (x - mean)/std into the conv, in f32 (the narrow-dtype cast happens only
        # on the final Toeplitz weights, so small-std channels keep the f32 fold exact).
        w_fold = conv_w / std.reshape(1, 1, C, 1)                          # [KH,KW,C,h]
        b_fold = conv_b - np.einsum("hwco,c->o", w_fold, mean)             # [hidden]

        self._mean = mean
        self._w_fold, self._b_fold = w_fold, b_fold
        self._KH, self._KW, self._C, self._hidden = KH, KW, C, hidden

        # lane-dense padded sizes: outputs and MXU N dims are multiples of 128.
        self._HP = _round_up(hidden, 128)
        self._CP = _round_up(num_classes, 128)

        b_pad = np.zeros((1, self._HP), np.float32)
        b_pad[0, :hidden] = b_fold
        fcw_pad = np.zeros((self._HP, self._CP), np.float32)
        fcw_pad[:hidden, :num_classes] = fc_w
        fcb_pad = np.zeros((1, self._CP), np.float32)
        fcb_pad[0, :num_classes] = fc_b
        self._b_pad = jnp.asarray(b_pad)
        self._fcw_pad = jnp.asarray(fcw_pad)
        self._fcb_pad = jnp.asarray(fcb_pad)

        self._cache = {}   # (H, W) -> (wbig, fill)

    def _prepared(self, H, W):
        key = (H, W)
        if key in self._cache:
            return self._cache[key]
        KH, KW, C, hidden, HP = self._KH, self._KW, self._C, self._hidden, self._HP
        pw = (KW - 1) // 2
        Wp = W + 2 * pw
        WpC = Wp * C

        # Block-Toeplitz conv weight: wbig[ky, (x+kx)*C + c, x*HP + o] = w_fold[ky,kx,c,o].
        # One lane-dense matmul per ky over the flattened padded row replaces the whole
        # im2col (no per-tap stores / no patch scratch inside the kernel).
        wbig = np.zeros((KH, WpC, W * HP), np.float32)
        for kx in range(KW):
            for x in range(W):
                j0 = (x + kx) * C
                wbig[:, j0:j0 + C, x * HP:x * HP + hidden] = self._w_fold[:, kx, :, :]

        # halo fill pattern: per-channel mean tiled across the padded row (raw scale;
        # the folded bias makes it equivalent to zero-padding the normalized image).
        fill = np.tile(self._mean, Wp).reshape(1, 1, WpC)

        prep = (jnp.asarray(wbig, dtype=self.compute_dtype),
                jnp.asarray(fill, dtype=self.compute_dtype))
        self._cache[key] = prep
        return prep

    def forward(self, images, get_features=False):
        B, H, W, C = images.shape
        assert C == self._C
        wbig, fill = self._prepared(H, W)
        # collapse (W, C) into one trailing lane dim — a free view reshape in XLA.
        x2d = images.astype(jnp.float32).reshape(B, H, W * C)
        y_pad, f_pad = fused_forward(
            x2d, wbig, self._b_pad, self._fcw_pad, self._fcb_pad, fill,
            H=H, W=W, C=C, KH=self._KH, KW=self._KW, HP=self._HP, CP=self._CP)
        y = y_pad[:, :self.num_classes]
        f = f_pad[:, :self._hidden]
        if get_features:
            return (y, f)
        return y

    def get_features(self, images):
        _, f = self.forward(images, get_features=True)
        return f


# ----------------------------------------------------------------------------
# Pure-JAX reference (unfused, original parameters) for correctness check
# ----------------------------------------------------------------------------
def reference_forward(images, params):
    x = (images - params["mean"]) / params["std"]
    fmap = jax.lax.conv_general_dilated(
        x, params["conv_w"], window_strides=(1, 1), padding="SAME",
        dimension_numbers=("NHWC", "HWIO", "NHWC"),
    ) + params["conv_b"]
    fmap = jnp.maximum(fmap, 0.0)
    f = jnp.mean(fmap, axis=(1, 2))
    y = f @ params["fc_w"] + params["fc_b"]
    return y, f


if __name__ == "__main__":
    # small shapes: batch=2, channels=4, spatial=16, hidden=32, classes=10
    B, H, W, C = 2, 16, 16, 4
    hidden, num_classes = 32, 10

    key = jax.random.PRNGKey(0)
    k_img, k_cw, k_cb, k_fw, k_fb = jax.random.split(key, 5)

    images = jax.random.normal(k_img, (B, H, W, C), dtype=jnp.float32)

    params = {
        "mean": jnp.array([0.1, 0.2, 0.3, 0.4], jnp.float32).reshape(1, 1, 1, C),
        "std": jnp.array([0.5, 0.6, 0.7, 0.8], jnp.float32).reshape(1, 1, 1, C),
        "conv_w": jax.random.normal(k_cw, (3, 3, C, hidden), jnp.float32) * 0.1,
        "conv_b": jax.random.normal(k_cb, (hidden,), jnp.float32) * 0.1,
        "fc_w": jax.random.normal(k_fw, (hidden, num_classes), jnp.float32) * 0.1,
        "fc_b": jax.random.normal(k_fb, (num_classes,), jnp.float32) * 0.1,
    }

    y_ref, f_ref = reference_forward(images, params)

    # f32 MXU operands: tight check of the fused structure (fold / halo / Toeplitz conv
    # / GAP / classifier).
    model_f32 = ClassificationModel(num_classes, params, compute_dtype=jnp.float32)
    y32, feat32 = model_f32.forward(images, get_features=True)
    jax.block_until_ready((y32, feat32))
    assert y32.shape == (B, num_classes) and feat32.shape == (B, hidden)
    assert jnp.allclose(y32, y_ref, rtol=5e-4, atol=5e-4)
    assert jnp.allclose(feat32, f_ref, rtol=5e-4, atol=5e-4)
    assert jnp.allclose(model_f32.forward(images), y_ref, rtol=5e-4, atol=5e-4)
    assert jnp.allclose(model_f32.get_features(images), f_ref, rtol=5e-4, atol=5e-4)

    # bf16 MXU operands (default; the fast path on v6e/v7x), f32 accumulation.
    model_bf16 = ClassificationModel(num_classes, params)
    y16, feat16 = model_bf16.forward(images, get_features=True)
    jax.block_until_ready((y16, feat16))
    assert jnp.allclose(y16, y_ref, rtol=3e-2, atol=3e-2)
    assert jnp.allclose(feat16, f_ref, rtol=3e-2, atol=3e-2)

    print("KERNEL_OK")
</pallas_src>

<mosaic_0001>
module attributes {stable_mosaic.version = 11 : i64} {
  func.func @_fused_kernel(%arg0: i32, %arg1: memref<2x16x64xf32, #tpu.memory_space<vmem>>, %arg2: memref<3x72x2048xf32, #tpu.memory_space<vmem>>, %arg3: memref<1x128xf32, #tpu.memory_space<vmem>>, %arg4: memref<128x128xf32, #tpu.memory_space<vmem>>, %arg5: memref<1x128xf32, #tpu.memory_space<vmem>>, %arg6: memref<1x1x72xf32, #tpu.memory_space<vmem>>, %arg7: memref<2x128xf32, #tpu.memory_space<vmem>>, %arg8: memref<2x128xf32, #tpu.memory_space<vmem>>, %arg9: memref<2x18x72xf32, #tpu.memory_space<vmem>>) attributes {dimension_semantics = [#tpu.dimension_semantics<parallel>], iteration_bounds = array<i64: 1>, scalar_prefetch = 0 : i64, scratch_operands = 1 : i64, tpu.core_type = #tpu.core_type<tc>, window_params = [{transform_indices = @transform_0, window_bounds = array<i64: 2, 16, 64>}, {pipeline_mode = #tpu.pipeline_mode<synchronous>, transform_indices = @transform_1, window_bounds = array<i64: 3, 72, 2048>}, {pipeline_mode = #tpu.pipeline_mode<synchronous>, transform_indices = @transform_2, window_bounds = array<i64: 1, 128>}, {pipeline_mode = #tpu.pipeline_mode<synchronous>, transform_indices = @transform_3, window_bounds = array<i64: 128, 128>}, {pipeline_mode = #tpu.pipeline_mode<synchronous>, transform_indices = @transform_4, window_bounds = array<i64: 1, 128>}, {pipeline_mode = #tpu.pipeline_mode<synchronous>, transform_indices = @transform_5, window_bounds = array<i64: 1, 1, 72>}, {transform_indices = @transform_6, window_bounds = array<i64: 2, 128>}, {transform_indices = @transform_7, window_bounds = array<i64: 2, 128>}]} {
    %c0 = arith.constant 0 : index
    %c0_0 = arith.constant 0 : index
    %c0_1 = arith.constant 0 : index
    %0 = vector.load %arg6[%c0, %c0_0, %c0_1] : memref<1x1x72xf32, #tpu.memory_space<vmem>>, vector<1x1x72xf32>
    %1 = vector.shape_cast %0 : vector<1x1x72xf32> to vector<1x1x72xf32>
    %2 = vector.broadcast %1 : vector<1x1x72xf32> to vector<2x1x72xf32>
    %c0_2 = arith.constant 0 : index
    %c0_3 = arith.constant 0 : index
    %c0_4 = arith.constant 0 : index
    %3 = vector.load %arg9[%c0_2, %c0_3, %c0_4] : memref<2x18x72xf32, #tpu.memory_space<vmem>>, vector<2x1x72xf32>
    tpu.vector_store %arg9[%c0_2, %c0_3, %c0_4], %2 {strides = array<i32>} : memref<2x18x72xf32, #tpu.memory_space<vmem>>, vector<2x1x72xf32>,
    %4 = vector.shape_cast %0 : vector<1x1x72xf32> to vector<1x1x72xf32>
    %5 = vector.broadcast %4 : vector<1x1x72xf32> to vector<2x1x72xf32>
    %c0_5 = arith.constant 0 : index
    %c17 = arith.constant 17 : index
    %c0_6 = arith.constant 0 : index
    %6 = vector.load %arg9[%c0_5, %c17, %c0_6] : memref<2x18x72xf32, #tpu.memory_space<vmem>>, vector<2x1x72xf32>
    tpu.vector_store %arg9[%c0_5, %c17, %c0_6], %5 {strides = array<i32>} : memref<2x18x72xf32, #tpu.memory_space<vmem>>, vector<2x1x72xf32>,
    %7 = vector.extract_strided_slice %0 {offsets = [0, 0, 0], sizes = [1, 1, 4], strides = [1, 1, 1]} : vector<1x1x72xf32> to vector<1x1x4xf32>
    %8 = vector.shape_cast %7 : vector<1x1x4xf32> to vector<1x1x4xf32>
    %9 = vector.broadcast %8 : vector<1x1x4xf32> to vector<2x16x4xf32>
    %c0_7 = arith.constant 0 : index
    %c1 = arith.constant 1 : index
    %c0_8 = arith.constant 0 : index
    %10 = vector.load %arg9[%c0_7, %c1, %c0_8] : memref<2x18x72xf32, #tpu.memory_space<vmem>>, vector<2x16x4xf32>
    tpu.vector_store %arg9[%c0_7, %c1, %c0_8], %9 {strides = array<i32>} : memref<2x18x72xf32, #tpu.memory_space<vmem>>, vector<2x16x4xf32>,
    %11 = vector.extract_strided_slice %0 {offsets = [0, 0, 68], sizes = [1, 1, 4], strides = [1, 1, 1]} : vector<1x1x72xf32> to vector<1x1x4xf32>
    %12 = vector.shape_cast %11 : vector<1x1x4xf32> to vector<1x1x4xf32>
    %13 = vector.broadcast %12 : vector<1x1x4xf32> to vector<2x16x4xf32>
    %c0_9 = arith.constant 0 : index
    %c1_10 = arith.constant 1 : index
    %c68 = arith.constant 68 : index
    %14 = vector.load %arg9[%c0_9, %c1_10, %c68] : memref<2x18x72xf32, #tpu.memory_space<vmem>>, vector<2x16x4xf32>
    tpu.vector_store %arg9[%c0_9, %c1_10, %c68], %13 {strides = array<i32>} : memref<2x18x72xf32, #tpu.memory_space<vmem>>, vector<2x16x4xf32>,
    %c0_11 = arith.constant 0 : index
    %c0_12 = arith.constant 0 : index
    %c0_13 = arith.constant 0 : index
    %15 = vector.load %arg1[%c0_11, %c0_12, %c0_13] : memref<2x16x64xf32, #tpu.memory_space<vmem>>, vector<2x16x64xf32>
    %c0_14 = arith.constant 0 : index
    %c1_15 = arith.constant 1 : index
    %c4 = arith.constant 4 : index
    %16 = vector.load %arg9[%c0_14, %c1_15, %c4] : memref<2x18x72xf32, #tpu.memory_space<vmem>>, vector<2x16x64xf32>
    tpu.vector_store %arg9[%c0_14, %c1_15, %c4], %15 {strides = array<i32>} : memref<2x18x72xf32, #tpu.memory_space<vmem>>, vector<2x16x64xf32>,
    %c0_16 = arith.constant 0 : index
    %c0_17 = arith.constant 0 : index
    %c0_18 = arith.constant 0 : index
    %17 = vector.load %arg9[%c0_16, %c0_17, %c0_18] : memref<2x18x72xf32, #tpu.memory_space<vmem>>, vector<2x16x72xf32>
    %18 = vector.shape_cast %17 : vector<2x16x72xf32> to vector<32x72xf32>
    %c0_19 = arith.constant 0 : index
    %c0_20 = arith.constant 0 : index
    %c0_21 = arith.constant 0 : index
    %19 = vector.load %arg2[%c0_19, %c0_20, %c0_21] : memref<3x72x2048xf32, #tpu.memory_space<vmem>>, vector<1x72x2048xf32>
    %20 = vector.shape_cast %19 : vector<1x72x2048xf32> to vector<72x2048xf32>
    %cst = arith.constant dense<0.000000e+00> : vector<32x2048xf32>
    %21 = tpu.matmul %18, %20, %cst {dimension_numbers = #tpu.dot_dimension_numbers<[1], [0], [0], [1], [0, 0, 1, 1], [], []>} : vector<32x72xf32>, vector<72x2048xf32>, vector<32x2048xf32> -> vector<32x2048xf32>
    %c0_22 = arith.constant 0 : index
    %c1_23 = arith.constant 1 : index
    %c0_24 = arith.constant 0 : index
    %22 = vector.load %arg9[%c0_22, %c1_23, %c0_24] : memref<2x18x72xf32, #tpu.memory_space<vmem>>, vector<2x16x72xf32>
    %23 = vector.shape_cast %22 : vector<2x16x72xf32> to vector<32x72xf32>
    %c1_25 = arith.constant 1 : index
    %c0_26 = arith.constant 0 : index
    %c0_27 = arith.constant 0 : index
    %24 = vector.load %arg2[%c1_25, %c0_26, %c0_27] : memref<3x72x2048xf32, #tpu.memory_space<vmem>>, vector<1x72x2048xf32>
    %25 = vector.shape_cast %24 : vector<1x72x2048xf32> to vector<72x2048xf32>
    %cst_28 = arith.constant dense<0.000000e+00> : vector<32x2048xf32>
    %26 = tpu.matmul %23, %25, %cst_28 {dimension_numbers = #tpu.dot_dimension_numbers<[1], [0], [0], [1], [0, 0, 1, 1], [], []>} : vector<32x72xf32>, vector<72x2048xf32>, vector<32x2048xf32> -> vector<32x2048xf32>
    %27 = arith.addf %21, %26 : vector<32x2048xf32>
    %c0_29 = arith.constant 0 : index
    %c2 = arith.constant 2 : index
    %c0_30 = arith.constant 0 : index
    %28 = vector.load %arg9[%c0_29, %c2, %c0_30] : memref<2x18x72xf32, #tpu.memory_space<vmem>>, vector<2x16x72xf32>
    %29 = vector.shape_cast %28 : vector<2x16x72xf32> to vector<32x72xf32>
    %c2_31 = arith.constant 2 : index
    %c0_32 = arith.constant 0 : index
    %c0_33 = arith.constant 0 : index
    %30 = vector.load %arg2[%c2_31, %c0_32, %c0_33] : memref<3x72x2048xf32, #tpu.memory_space<vmem>>, vector<1x72x2048xf32>
    %31 = vector.shape_cast %30 : vector<1x72x2048xf32> to vector<72x2048xf32>
    %cst_34 = arith.constant dense<0.000000e+00> : vector<32x2048xf32>
    %32 = tpu.matmul %29, %31, %cst_34 {dimension_numbers = #tpu.dot_dimension_numbers<[1], [0], [0], [1], [0, 0, 1, 1], [], []>} : vector<32x72xf32>, vector<72x2048xf32>, vector<32x2048xf32> -> vector<32x2048xf32>
    %33 = arith.addf %27, %32 : vector<32x2048xf32>
    %c0_35 = arith.constant 0 : index
    %c0_36 = arith.constant 0 : index
    %34 = vector.load %arg3[%c0_35, %c0_36] : memref<1x128xf32, #tpu.memory_space<vmem>>, vector<1x128xf32>
    %35 = vector.extract_strided_slice %33 {offsets = [0, 0], sizes = [32, 128], strides = [1, 1]} : vector<32x2048xf32> to vector<32x128xf32>
    %36 = vector.broadcast %34 : vector<1x128xf32> to vector<32x128xf32>
    %37 = arith.addf %35, %36 : vector<32x128xf32>
    %cst_37 = arith.constant 0.000000e+00 : f32
    %38 = vector.broadcast %cst_37 : f32 to vector<32x128xf32>
    %39 = arith.maximumf %37, %38 : vector<32x128xf32>
    %40 = vector.extract_strided_slice %33 {offsets = [0, 128], sizes = [32, 128], strides = [1, 1]} : vector<32x2048xf32> to vector<32x128xf32>
    %41 = vector.broadcast %34 : vector<1x128xf32> to vector<32x128xf32>
    %42 = arith.addf %40, %41 : vector<32x128xf32>
    %cst_38 = arith.constant 0.000000e+00 : f32
    %43 = vector.broadcast %cst_38 : f32 to vector<32x128xf32>
    %44 = arith.maximumf %42, %43 : vector<32x128xf32>
    %45 = arith.addf %39, %44 : vector<32x128xf32>
    %46 = vector.extract_strided_slice %33 {offsets = [0, 256], sizes = [32, 128], strides = [1, 1]} : vector<32x2048xf32> to vector<32x128xf32>
    %47 = vector.broadcast %34 : vector<1x128xf32> to vector<32x128xf32>
    %48 = arith.addf %46, %47 : vector<32x128xf32>
    %cst_39 = arith.constant 0.000000e+00 : f32
    %49 = vector.broadcast %cst_39 : f32 to vector<32x128xf32>
    %50 = arith.maximumf %48, %49 : vector<32x128xf32>
    %51 = arith.addf %45, %50 : vector<32x128xf32>
    %52 = vector.extract_strided_slice %33 {offsets = [0, 384], sizes = [32, 128], strides = [1, 1]} : vector<32x2048xf32> to vector<32x128xf32>
    %53 = vector.broadcast %34 : vector<1x128xf32> to vector<32x128xf32>
    %54 = arith.addf %52, %53 : vector<32x128xf32>
    %cst_40 = arith.constant 0.000000e+00 : f32
    %55 = vector.broadcast %cst_40 : f32 to vector<32x128xf32>
    %56 = arith.maximumf %54, %55 : vector<32x128xf32>
    %57 = arith.addf %51, %56 : vector<32x128xf32>
    %58 = vector.extract_strided_slice %33 {offsets = [0, 512], sizes = [32, 128], strides = [1, 1]} : vector<32x2048xf32> to vector<32x128xf32>
    %59 = vector.broadcast %34 : vector<1x128xf32> to vector<32x128xf32>
    %60 = arith.addf %58, %59 : vector<32x128xf32>
    %cst_41 = arith.constant 0.000000e+00 : f32
    %61 = vector.broadcast %cst_41 : f32 to vector<32x128xf32>
    %62 = arith.maximumf %60, %61 : vector<32x128xf32>
    %63 = arith.addf %57, %62 : vector<32x128xf32>
    %64 = vector.extract_strided_slice %33 {offsets = [0, 640], sizes = [32, 128], strides = [1, 1]} : vector<32x2048xf32> to vector<32x128xf32>
    %65 = vector.broadcast %34 : vector<1x128xf32> to vector<32x128xf32>
    %66 = arith.addf %64, %65 : vector<32x128xf32>
    %cst_42 = arith.constant 0.000000e+00 : f32
    %67 = vector.broadcast %cst_42 : f32 to vector<32x128xf32>
    %68 = arith.maximumf %66, %67 : vector<32x128xf32>
    %69 = arith.addf %63, %68 : vector<32x128xf32>
    %70 = vector.extract_strided_slice %33 {offsets = [0, 768], sizes = [32, 128], strides = [1, 1]} : vector<32x2048xf32> to vector<32x128xf32>
    %71 = vector.broadcast %34 : vector<1x128xf32> to vector<32x128xf32>
    %72 = arith.addf %70, %71 : vector<32x128xf32>
    %cst_43 = arith.constant 0.000000e+00 : f32
    %73 = vector.broadcast %cst_43 : f32 to vector<32x128xf32>
    %74 = arith.maximumf %72, %73 : vector<32x128xf32>
    %75 = arith.addf %69, %74 : vector<32x128xf32>
    %76 = vector.extract_strided_slice %33 {offsets = [0, 896], sizes = [32, 128], strides = [1, 1]} : vector<32x2048xf32> to vector<32x128xf32>
    %77 = vector.broadcast %34 : vector<1x128xf32> to vector<32x128xf32>
    %78 = arith.addf %76, %77 : vector<32x128xf32>
    %cst_44 = arith.constant 0.000000e+00 : f32
    %79 = vector.broadcast %cst_44 : f32 to vector<32x128xf32>
    %80 = arith.maximumf %78, %79 : vector<32x128xf32>
    %81 = arith.addf %75, %80 : vector<32x128xf32>
    %82 = vector.extract_strided_slice %33 {offsets = [0, 1024], sizes = [32, 128], strides = [1, 1]} : vector<32x2048xf32> to vector<32x128xf32>
    %83 = vector.broadcast %34 : vector<1x128xf32> to vector<32x128xf32>
    %84 = arith.addf %82, %83 : vector<32x128xf32>
    %cst_45 = arith.constant 0.000000e+00 : f32
    %85 = vector.broadcast %cst_45 : f32 to vector<32x128xf32>
    %86 = arith.maximumf %84, %85 : vector<32x128xf32>
    %87 = arith.addf %81, %86 : vector<32x128xf32>
    %88 = vector.extract_strided_slice %33 {offsets = [0, 1152], sizes = [32, 128], strides = [1, 1]} : vector<32x2048xf32> to vector<32x128xf32>
    %89 = vector.broadcast %34 : vector<1x128xf32> to vector<32x128xf32>
    %90 = arith.addf %88, %89 : vector<32x128xf32>
    %cst_46 = arith.constant 0.000000e+00 : f32
    %91 = vector.broadcast %cst_46 : f32 to vector<32x128xf32>
    %92 = arith.maximumf %90, %91 : vector<32x128xf32>
    %93 = arith.addf %87, %92 : vector<32x128xf32>
    %94 = vector.extract_strided_slice %33 {offsets = [0, 1280], sizes = [32, 128], strides = [1, 1]} : vector<32x2048xf32> to vector<32x128xf32>
    %95 = vector.broadcast %34 : vector<1x128xf32> to vector<32x128xf32>
    %96 = arith.addf %94, %95 : vector<32x128xf32>
    %cst_47 = arith.constant 0.000000e+00 : f32
    %97 = vector.broadcast %cst_47 : f32 to vector<32x128xf32>
    %98 = arith.maximumf %96, %97 : vector<32x128xf32>
    %99 = arith.addf %93, %98 : vector<32x128xf32>
    %100 = vector.extract_strided_slice %33 {offsets = [0, 1408], sizes = [32, 128], strides = [1, 1]} : vector<32x2048xf32> to vector<32x128xf32>
    %101 = vector.broadcast %34 : vector<1x128xf32> to vector<32x128xf32>
    %102 = arith.addf %100, %101 : vector<32x128xf32>
    %cst_48 = arith.constant 0.000000e+00 : f32
    %103 = vector.broadcast %cst_48 : f32 to vector<32x128xf32>
    %104 = arith.maximumf %102, %103 : vector<32x128xf32>
    %105 = arith.addf %99, %104 : vector<32x128xf32>
    %106 = vector.extract_strided_slice %33 {offsets = [0, 1536], sizes = [32, 128], strides = [1, 1]} : vector<32x2048xf32> to vector<32x128xf32>
    %107 = vector.broadcast %34 : vector<1x128xf32> to vector<32x128xf32>
    %108 = arith.addf %106, %107 : vector<32x128xf32>
    %cst_49 = arith.constant 0.000000e+00 : f32
    %109 = vector.broadcast %cst_49 : f32 to vector<32x128xf32>
    %110 = arith.maximumf %108, %109 : vector<32x128xf32>
    %111 = arith.addf %105, %110 : vector<32x128xf32>
    %112 = vector.extract_strided_slice %33 {offsets = [0, 1664], sizes = [32, 128], strides = [1, 1]} : vector<32x2048xf32> to vector<32x128xf32>
    %113 = vector.broadcast %34 : vector<1x128xf32> to vector<32x128xf32>
    %114 = arith.addf %112, %113 : vector<32x128xf32>
    %cst_50 = arith.constant 0.000000e+00 : f32
    %115 = vector.broadcast %cst_50 : f32 to vector<32x128xf32>
    %116 = arith.maximumf %114, %115 : vector<32x128xf32>
    %117 = arith.addf %111, %116 : vector<32x128xf32>
    %118 = vector.extract_strided_slice %33 {offsets = [0, 1792], sizes = [32, 128], strides = [1, 1]} : vector<32x2048xf32> to vector<32x128xf32>
    %119 = vector.broadcast %34 : vector<1x128xf32> to vector<32x128xf32>
    %120 = arith.addf %118, %119 : vector<32x128xf32>
    %cst_51 = arith.constant 0.000000e+00 : f32
    %121 = vector.broadcast %cst_51 : f32 to vector<32x128xf32>
    %122 = arith.maximumf %120, %121 : vector<32x128xf32>
    %123 = arith.addf %117, %122 : vector<32x128xf32>
    %124 = vector.extract_strided_slice %33 {offsets = [0, 1920], sizes = [32, 128], strides = [1, 1]} : vector<32x2048xf32> to vector<32x128xf32>
    %125 = vector.broadcast %34 : vector<1x128xf32> to vector<32x128xf32>
    %126 = arith.addf %124, %125 : vector<32x128xf32>
    %cst_52 = arith.constant 0.000000e+00 : f32
    %127 = vector.broadcast %cst_52 : f32 to vector<32x128xf32>
    %128 = arith.maximumf %126, %127 : vector<32x128xf32>
    %129 = arith.addf %123, %128 : vector<32x128xf32>
    %130 = vector.shape_cast %129 : vector<32x128xf32> to vector<2x16x128xf32>
    %cst_53 = arith.constant dense<0.000000e+00> : vector<2x128xf32>
    %131 = vector.multi_reduction <add>, %130, %cst_53 [1] : vector<2x16x128xf32> to vector<2x128xf32>
    %cst_54 = arith.constant 3.906250e-03 : f32
    %132 = vector.broadcast %cst_54 : f32 to vector<2x128xf32>
    %133 = arith.mulf %131, %132 : vector<2x128xf32>
    %c0_55 = arith.constant 0 : index
    %c0_56 = arith.constant 0 : index
    %134 = vector.load %arg8[%c0_55, %c0_56] : memref<2x128xf32, #tpu.memory_space<vmem>>, vector<2x128xf32>
    tpu.vector_store %arg8[%c0_55, %c0_56], %133 {strides = array<i32>} : memref<2x128xf32, #tpu.memory_space<vmem>>, vector<2x128xf32>,
    %c0_57 = arith.constant 0 : index
    %c0_58 = arith.constant 0 : index
    %135 = vector.load %arg4[%c0_57, %c0_58] : memref<128x128xf32, #tpu.memory_space<vmem>>, vector<128x128xf32>
    %cst_59 = arith.constant dense<0.000000e+00> : vector<2x128xf32>
    %136 = tpu.matmul %133, %135, %cst_59 {dimension_numbers = #tpu.dot_dimension_numbers<[1], [0], [0], [1], [0, 0, 1, 1], [], []>} : vector<2x128xf32>, vector<128x128xf32>, vector<2x128xf32> -> vector<2x128xf32>
    %c0_60 = arith.constant 0 : index
    %c0_61 = arith.constant 0 : index
    %137 = vector.load %arg5[%c0_60, %c0_61] : memref<1x128xf32, #tpu.memory_space<vmem>>, vector<1x128xf32>
    %138 = vector.broadcast %137 : vector<1x128xf32> to vector<2x128xf32>
    %139 = arith.addf %136, %138 : vector<2x128xf32>
    %c0_62 = arith.constant 0 : index
    %c0_63 = arith.constant 0 : index
    %140 = vector.load %arg7[%c0_62, %c0_63] : memref<2x128xf32, #tpu.memory_space<vmem>>, vector<2x128xf32>
    tpu.vector_store %arg7[%c0_62, %c0_63], %139 {strides = array<i32>} : memref<2x128xf32, #tpu.memory_space<vmem>>, vector<2x128xf32>,
    return
  }
  func.func @transform_0(%arg0: i32) -> (i32, i32, i32) {
    %c0_i32 = arith.constant 0 : i32
    %c0_i32_0 = arith.constant 0 : i32
    %c0_i32_1 = arith.constant 0 : i32
    return %arg0, %c0_i32, %c0_i32_0 : i32, i32, i32
  }
  func.func @transform_1(%arg0: i32) -> (i32, i32, i32) {
    %c0_i32 = arith.constant 0 : i32
    %c0_i32_0 = arith.constant 0 : i32
    %c0_i32_1 = arith.constant 0 : i32
    %c0_i32_2 = arith.constant 0 : i32
    return %c0_i32, %c0_i32_0, %c0_i32_1 : i32, i32, i32
  }
  func.func @transform_2(%arg0: i32) -> (i32, i32) {
    %c0_i32 = arith.constant 0 : i32
    %c0_i32_0 = arith.constant 0 : i32
    %c0_i32_1 = arith.constant 0 : i32
    return %c0_i32, %c0_i32_0 : i32, i32
  }
  func.func @transform_3(%arg0: i32) -> (i32, i32) {
    %c0_i32 = arith.constant 0 : i32
    %c0_i32_0 = arith.constant 0 : i32
    %c0_i32_1 = arith.constant 0 : i32
    return %c0_i32, %c0_i32_0 : i32, i32
  }
  func.func @transform_4(%arg0: i32) -> (i32, i32) {
    %c0_i32 = arith.constant 0 : i32
    %c0_i32_0 = arith.constant 0 : i32
    %c0_i32_1 = arith.constant 0 : i32
    return %c0_i32, %c0_i32_0 : i32, i32
  }
  func.func @transform_5(%arg0: i32) -> (i32, i32, i32) {
    %c0_i32 = arith.constant 0 : i32
    %c0_i32_0 = arith.constant 0 : i32
    %c0_i32_1 = arith.constant 0 : i32
    %c0_i32_2 = arith.constant 0 : i32
    return %c0_i32, %c0_i32_0, %c0_i32_1 : i32, i32, i32
  }
  func.func @transform_6(%arg0: i32) -> (i32, i32) {
    %c0_i32 = arith.constant 0 : i32
    %c0_i32_0 = arith.constant 0 : i32
    return %arg0, %c0_i32 : i32, i32
  }
  func.func @transform_7(%arg0: i32) -> (i32, i32) {
    %c0_i32 = arith.constant 0 : i32
    %c0_i32_0 = arith.constant 0 : i32
    return %arg0, %c0_i32 : i32, i32
  }
}

</mosaic_0001>

<bundles_post_ra>
// kernel: tpu_custom_call.1
= control target key start
LH: loop header
LB: loop body
LE: loop exit
PB: predicated region body
PF: predicated region fallthrough
CT: control target
= control target key end

     0   :  { %13 = vsyncpa [#allocation4], 0  ;;  %s4692_s0 = inlined_call_operand.hbm [shape: f32[2,16,64], index: 0, kind: input, shape index: {}]   ;;  %s4693_s1 = inlined_call_operand.hbm [shape: f32[3,72,2048], index: 1, kind: input, shape index: {}]   ;;  %s4694_s2 = inlined_call_operand.hbm [shape: f32[1,128], index: 2, kind: input, shape index: {}]   ;;  %s4695_s3 = inlined_call_operand.hbm [shape: f32[128,128], index: 3, kind: input, shape index: {}]   ;;  %s4696_s4 = inlined_call_operand.hbm [shape: f32[1,128], index: 4, kind: input, shape index: {}]   ;;  %s4697_s5 = inlined_call_operand.hbm [shape: f32[1,1,72], index: 5, kind: input, shape index: {}]   ;;  %s4698_s6 = inlined_call_operand.hbm [shape: f32[2,128], index: 6, kind: output, shape index: {0}]   ;;  %s4699_s7 = inlined_call_operand.hbm [shape: f32[2,128], index: 7, kind: output, shape index: {1}]  }
   0x1   :  { %14 = vsyncpa [#allocation7], 0 }
   0x2   :  { %15 = vsyncpa [#allocation10], 0 }
   0x3   :  { %16 = vsyncpa [#allocation13], 0 }
   0x4   :  { %17 = vsyncpa [#allocation5], 0 }
   0x5   :  { %18 = vsyncpa [#allocation16], 0  ;;  %s4065_s24 = smov [#allocation6]   ;;  %s3877_s28 = scalar_lea.hbm %s4693_s1, 55296 }
   0x6   :  { %s36_s25 = sshll.u32 %s4065_s24, 4  ;;  %p3878_p0 = scmp.ne.s32.totalorder %s4693_s1, %s3877_s28  ;;  %s37_s25 = int_to_ptr.vmem [resolvable:$true] %s36_s25 }
   0x7   :  { %p3881_p1 = scmp.lt.u32.totalorder %s3877_s28, %s4693_s1 }
   0x9   :  { %p3883_p2 = pnand %p3881_p1, %p3878_p0 }
   0xb   :  { %3886 = shalt.err (!%p3883_p2)
}
   0xc   :  { %s3887_s10 = scalar_lea.vmem %s37_s25, 55296  ;;  %p3892_p4 = scmp.lt.s32.totalorder %s37_s25, %s37_s25 }
   0xd   :  { %p3888_p3 = scmp.ne.s32.totalorder %s37_s25, %s3887_s10  ;;  %p3893_p5 = scmp.lt.s32.totalorder %s3887_s10, %s3887_s10 }
   0xf   :  { %p3894_p6 = por %p3893_p5, %p3892_p4 }
  0x11   :  { %p3895_p7 = pnand %p3894_p6, %p3888_p3 }
  0x13   :  { %3898 = shalt.err (!%p3895_p7)
}
  0x14   :  { %s4066_s11 = smov 2048   ;;  %s4067_s12 = smov 128  }
  0x15   :  { %42 = dma.hbm_to_vmem [thread:$0]  %s4693_s1, 55296, %s37_s25, [#allocation7], %s4066_s11, %s4066_s11, %s4067_s12  }
  0x16   :  { %s4068_s15 = smov [#allocation9]   ;;  %s4069_s17 = smov [#allocation3]  }
  0x17   :  { %s58_s16 = sshll.u32 %s4068_s15, 4  ;;  %s24_s18 = sshll.u32 %s4069_s17, 4  ;;  %s59_s16 = int_to_ptr.vmem [resolvable:$true] %s58_s16  ;;  %s4133_s18 = int_to_ptr.vmem [resolvable:$true] %s24_s18 }
  0x18   :  { %s3899_s21 = scalar_lea.hbm %s4695_s3, 2048 }
  0x19   :  { %p3900_p8 = scmp.ne.s32.totalorder %s4695_s3, %s3899_s21  ;;  %p3903_p9 = scmp.lt.u32.totalorder %s3899_s21, %s4695_s3 }
  0x1b   :  { %p3905_p10 = pnand %p3903_p9, %p3900_p8 }
  0x1d   :  { %3908 = shalt.err (!%p3905_p10)
}
  0x1e   :  { %s3909_s1 = scalar_lea.vmem %s59_s16, 2048  ;;  %p3914_p12 = scmp.lt.s32.totalorder %s59_s16, %s59_s16 }
  0x1f   :  { %p3910_p11 = scmp.ne.s32.totalorder %s59_s16, %s3909_s1  ;;  %p3915_p13 = scmp.lt.s32.totalorder %s3909_s1, %s3909_s1 }
  0x21   :  { %p3916_p0 = por %p3915_p13, %p3914_p12 }
  0x23   :  { %p3917_p1 = pnand %p3916_p0, %p3910_p11 }
  0x25   :  { %3920 = shalt.err (!%p3917_p1)
}
  0x26   :  { %s4070_s25 = smov 8   ;;  %s3921_s8 = scalar_lea.hbm %s4692_s0, 512 }
  0x27   :  { %64 = dma.hbm_to_vmem [thread:$0]  %s4695_s3, 2048, %s59_s16, [#allocation10], %s4067_s12, %s4067_s12, %s4070_s25  }
  0x28   :  { %p3922_p2 = scmp.ne.s32.totalorder %s4692_s0, %s3921_s8  ;;  %p3925_p3 = scmp.lt.u32.totalorder %s3921_s8, %s4692_s0 }
  0x2a   :  { %p3927_p4 = pnand %p3925_p3, %p3922_p2 }
  0x2c   :  { %3930 = shalt.err (!%p3927_p4)
}
  0x2d   :  { %s3931_s14 = scalar_lea.vmem %s4133_s18, 512  ;;  %p3936_p6 = scmp.lt.s32.totalorder %s4133_s18, %s4133_s18 }
  0x2e   :  { %p3932_p5 = scmp.ne.s32.totalorder %s4133_s18, %s3931_s14  ;;  %p3937_p7 = scmp.lt.s32.totalorder %s3931_s14, %s3931_s14 }
  0x30   :  { %p3938_p8 = por %p3937_p7, %p3936_p6 }
  0x32   :  { %p3939_p9 = pnand %p3938_p8, %p3932_p5 }
  0x34   :  { %3942 = shalt.err (!%p3939_p9)
}
  0x35   :  { %30 = dma.hbm_to_vmem [thread:$0]  %s4692_s0, 512, %s4133_s18, [#allocation4], %s4067_s12, %s4067_s12, %s4070_s25  }
  0x36   :  { %s4071_s16 = smov [#allocation8]   ;;  %s4072_s19 = smov [#allocation11]  }
  0x37   :  { %s49_s17 = sshll.u32 %s4071_s16, 4  ;;  %s71_s20 = sshll.u32 %s4072_s19, 4  ;;  %s50_s17 = int_to_ptr.vmem [resolvable:$true] %s49_s17  ;;  %s72_s20 = int_to_ptr.vmem [resolvable:$true] %s71_s20 }
  0x38   :  { %s3943_s23 = scalar_lea.hbm %s4694_s2, 16 }
  0x39   :  { %p3944_p10 = scmp.ne.s32.totalorder %s4694_s2, %s3943_s23  ;;  %p3947_p11 = scmp.lt.u32.totalorder %s3943_s23, %s4694_s2 }
  0x3b   :  { %p3949_p12 = pnand %p3947_p11, %p3944_p10 }
  0x3d   :  { %3952 = shalt.err (!%p3949_p12)
}
  0x3e   :  { %s3953_s0 = scalar_lea.vmem %s50_s17, 16  ;;  %s3957_s12 = scalar_lea.vmem %s50_s17, 32 }
  0x3f   :  { %p3954_p13 = scmp.ne.s32.totalorder %s50_s17, %s3953_s0  ;;  %p3958_p0 = scmp.lt.s32.totalorder %s50_s17, %s50_s17 }
  0x40   :  { %p3959_p1 = scmp.lt.s32.totalorder %s3957_s12, %s3953_s0 }
  0x42   :  { %p3960_p2 = por %p3959_p1, %p3958_p0 }
  0x44   :  { %p3961_p3 = pnand %p3960_p2, %p3954_p13 }
  0x46   :  { %3964 = shalt.err (!%p3961_p3)
}
  0x47   :  { %52 = dma.hbm_to_vmem [thread:$0]  %s4694_s2, 16, %s50_s17, [#allocation7]  }
  0x48   :  { %s3965_s30 = scalar_lea.hbm %s4696_s4, 16 }
  0x49   :  { %p3966_p4 = scmp.ne.s32.totalorder %s4696_s4, %s3965_s30  ;;  %p3969_p5 = scmp.lt.u32.totalorder %s3965_s30, %s4696_s4 }
  0x4b   :  { %p3971_p6 = pnand %p3969_p5, %p3966_p4 }
  0x4d   :  { %3974 = shalt.err (!%p3971_p6)
}
  0x4e   :  { %s3975_s13 = scalar_lea.vmem %s72_s20, 16  ;;  %s3979_s14 = scalar_lea.vmem %s72_s20, 32 }
  0x4f   :  { %p3976_p7 = scmp.ne.s32.totalorder %s72_s20, %s3975_s13  ;;  %p3980_p8 = scmp.lt.s32.totalorder %s72_s20, %s72_s20 }
  0x50   :  { %p3981_p9 = scmp.lt.s32.totalorder %s3979_s14, %s3975_s13 }
  0x52   :  { %p3982_p10 = por %p3981_p9, %p3980_p8 }
  0x54   :  { %p3983_p11 = pnand %p3982_p10, %p3976_p7 }
  0x56   :  { %3986 = shalt.err (!%p3983_p11)
}
  0x57   :  { %74 = dma.hbm_to_vmem [thread:$0]  %s4696_s4, 16, %s72_s20, [#allocation10]  }
  0x58   :  { %s4073_s15 = smov [#allocation12]   ;;  %s3987_s21 = scalar_lea.hbm %s4697_s5, 16 }
  0x59   :  { %s81_s16 = sshll.u32 %s4073_s15, 4  ;;  %p3988_p12 = scmp.ne.s32.totalorder %s4697_s5, %s3987_s21  ;;  %s82_s16 = int_to_ptr.vmem [resolvable:$true] %s81_s16 }
  0x5a   :  { %p3991_p13 = scmp.lt.u32.totalorder %s3987_s21, %s4697_s5 }
  0x5c   :  { %p3993_p0 = pnand %p3991_p13, %p3988_p12 }
  0x5e   :  { %3996 = shalt.err (!%p3993_p0)
}
  0x5f   :  { %s3997_s1 = scalar_lea.vmem %s82_s16, 16  ;;  %s4001_s4 = scalar_lea.vmem %s82_s16, 32 }
  0x60   :  { %p3998_p1 = scmp.ne.s32.totalorder %s82_s16, %s3997_s1  ;;  %p4002_p2 = scmp.lt.s32.totalorder %s82_s16, %s82_s16 }
  0x61   :  { %p4003_p3 = scmp.lt.s32.totalorder %s4001_s4, %s3997_s1 }
  0x63   :  { %p4004_p4 = por %p4003_p3, %p4002_p2 }
  0x65   :  { %p4005_p5 = pnand %p4004_p4, %p3998_p1 }
  0x67   :  { %4008 = shalt.err (!%p4005_p5)
}
  0x68   :  { %84 = dma.hbm_to_vmem [thread:$0]  %s4697_s5, 16, %s82_s16, [#allocation13]  }
  0x69   :  { %4053 = dma.done.wait [#allocation4], 512  }
  0x6a   :  { %4054 = vsyncadd [#allocation4], 4294966784 }
  0x6b   :  { %4055 = dma.done.wait [#allocation7], 55312  }
  0x6c   :  { %4056 = vsyncadd [#allocation7], 4294911984 }
  0x6d   :  { %4057 = dma.done.wait [#allocation10], 2064  }
  0x6e   :  { %4058 = vsyncadd [#allocation10], 4294965232 }
  0x6f   :  { %4059 = dma.done.wait [#allocation13], 16  }
  0x70   :  { %4060 = vsyncadd [#allocation13], 4294967280  ;;  %v4074_v0 = vmov 0.0   ;;  %v110_v1 = vlaneseq  ;;  %v125_v2 = vld [vmem:[#allocation3] sm:$0xff]  ;;  %v126_v3 = vld [vmem:[#allocation3 + $0x8] sm:$0xff]  ;;  %s4075_s0 = smov 4  }
  0x71   :  { %524 = vmatprep.mubr.f32.mxu1 %v4074_v0  ;;  %702 = vmatprep.mubr.f32.mxu0 %v4074_v0  ;;  %v127_v4 = vld [vmem:[#allocation3 + $0x10] sm:$0xff]  ;;  %v128_v5 = vld [vmem:[#allocation3 + $0x18] sm:$0xff]  ;;  %v304_v6 = vld [vmem:[#allocation6 + $0x488] sm:$0xff]  ;;  %vm104_vm0 = vcmask 581632   ;;  %vm115_vm1 = vcmask 31744   ;;  %vm120_vm2 = vcmask 589344  }
  0x72   :  { %133 = vrot.lane.b32.xlu0 %v125_v2, %s4075_s0  ;;  %137 = vrot.lane.b32.xlu1 %v127_v4, %s4075_s0  ;;  %v320_v7 = vld [vmem:[#allocation6 + $0x508] sm:$0xff]  ;;  %v303_v11 = vld [vmem:[#allocation6 + $0x480] sm:$0xff]  ;;  %v111_v12 = vshrl.u32 %v110_v1, 7  ;;  %v306_v59 = vld [vmem:[#allocation6 + $0x498] sm:$0xff]  ;;  %vm145_vm3 = vcmask 556064   ;;  %vm447_vm4 = vcmask 588800  }
  0x73   :  { %v3326_v8 = vpack.c.bf16 %v320_v7, %v304_v6  ;;  %v308_v9 = vld [vmem:[#allocation6 + $0x4a8] sm:$0xff]  ;;  %v319_v14 = vld [vmem:[#allocation6 + $0x500] sm:$0xff]  ;;  %v322_v60 = vld [vmem:[#allocation6 + $0x518] sm:$0xff]  ;;  %vm4077_vm5 = vmmov 0   ;;  %vm3046_vm6 = vcmask 1041409   ;;  %s4078_s5 = smov [#allocation15]  }
  0x74   :  { %v324_v10 = vld [vmem:[#allocation6 + $0x528] sm:$0xff]  ;;  %v307_v15 = vld [vmem:[#allocation6 + $0x4a0] sm:$0xff]  ;;  %v3328_v17 = vpack.c.bf16 %v319_v14, %v303_v11  ;;  %v112_v31 = vsub.s32 0, %v111_v12  ;;  %v3342_v2 = vpack.c.bf16 %v322_v60, %v306_v59  ;;  %v305_v7 = vld [vmem:[#allocation6 + $0x490] sm:$0xff]  ;;  %s3160_s12 = sshll.u32 %s4078_s5, 4  ;;  %s3161_s12 = int_to_ptr.vmem [resolvable:$true] %s3160_s12 }
  0x75   :  { %v3358_v13 = vpack.c.bf16 %v324_v10, %v308_v9  ;;  %v323_v16 = vld [vmem:[#allocation6 + $0x520] sm:$0xff]  ;;  %3327 = vmatprep.subr.bf16.mxu1 %v3326_v8  ;;  %v336_v19 = vld [vmem:[#allocation6 + $0x588] sm:$0xff]  ;;  %v321_v8 = vld [vmem:[#allocation6 + $0x510] sm:$0xff]  ;;  %s4009_s18 = scalar_lea.vmem %s3161_s12, 32  ;;  %p4014_p7 = scmp.lt.s32.totalorder %s3161_s12, %s3161_s12 }
  0x76   :  { %v3360_v18 = vpack.c.bf16 %v323_v16, %v307_v15  ;;  %v352_v20 = vld [vmem:[#allocation6 + $0x608] sm:$0xff]  ;;  %135 = vrot.lane.b32.xlu0 %v126_v3, %s4075_s0  ;;  %139 = vrot.lane.b32.xlu1 %v128_v5, %s4075_s0  ;;  %v335_v24 = vld [vmem:[#allocation6 + $0x580] sm:$0xff]  ;;  %v338_v11 = vld [vmem:[#allocation6 + $0x598] sm:$0xff]  ;;  %p4010_p6 = scmp.ne.s32.totalorder %s3161_s12, %s4009_s18  ;;  %p4015_p8 = scmp.lt.s32.totalorder %s4009_s18, %s4009_s18 }
  0x77   :  { %v340_v21 = vld [vmem:[#allocation6 + $0x5a8] sm:$0xff]  ;;  %v3330_v22 = vpack.c.bf16 %v352_v20, %v336_v19  ;;  %v351_v25 = vld [vmem:[#allocation6 + $0x600] sm:$0xff]  ;;  %3359 = vmatprep.subr.bf16.mxu0 %v3358_v13  ;;  %3329 = vmatpush1.bf16.msra.mxu1 %v3328_v17  ;;  %v354_v14 = vld [vmem:[#allocation6 + $0x618] sm:$0xff]  ;;  %v3344_v17 = vpack.c.bf16 %v321_v8, %v305_v7 }
  0x78   :  { %v356_v23 = vld [vmem:[#allocation6 + $0x628] sm:$0xff]  ;;  %v3332_v27 = vpack.c.bf16 %v351_v25, %v335_v24  ;;  %v339_v28 = vld [vmem:[#allocation6 + $0x5a0] sm:$0xff]  ;;  %3361 = vmatpush1.bf16.msra.mxu0 %v3360_v18  ;;  %v337_v19 = vld [vmem:[#allocation6 + $0x590] sm:$0xff]  ;;  %p4016_p9 = por %p4015_p8, %p4014_p7 }
  0x79   :  { %v3362_v26 = vpack.c.bf16 %v356_v23, %v340_v21  ;;  %v355_v29 = vld [vmem:[#allocation6 + $0x620] sm:$0xff]  ;;  %v368_v30 = vld [vmem:[#allocation6 + $0x688] sm:$0xff]  ;;  %3331 = vmatprep.subr.bf16.mxu1 %v3330_v22  ;;  %v353_v20 = vld [vmem:[#allocation6 + $0x610] sm:$0xff]  ;;  %v3346_v22 = vpack.c.bf16 %v354_v14, %v338_v11 }
  0x7a   :  { %v3364_v32 = vpack.c.bf16 %v355_v29, %v339_v28  ;;  %v384_v33 = vld [vmem:[#allocation6 + $0x708] sm:$0xff]  ;;  %v367_v38 = vld [vmem:[#allocation6 + $0x680] sm:$0xff]  ;;  %v370_v25 = vld [vmem:[#allocation6 + $0x698] sm:$0xff]  ;;  %p4017_p10 = pnand %p4016_p9, %p4010_p6 }
  0x7b   :  { %v372_v34 = vld [vmem:[#allocation6 + $0x6a8] sm:$0xff]  ;;  %3363 = vmatprep.subr.bf16.mxu0 %v3362_v26  ;;  %v3334_v36 = vpack.c.bf16 %v384_v33, %v368_v30  ;;  %v383_v39 = vld [vmem:[#allocation6 + $0x700] sm:$0xff]  ;;  %3333 = vmatpush1.bf16.msra.mxu1 %v3332_v27  ;;  %v386_v26 = vld [vmem:[#allocation6 + $0x718] sm:$0xff]  ;;  %v3348_v30 = vpack.c.bf16 %v353_v20, %v337_v19 }
  0x7c   :  { %v388_v35 = vld [vmem:[#allocation6 + $0x728] sm:$0xff]  ;;  %v371_v40 = vld [vmem:[#allocation6 + $0x6a0] sm:$0xff]  ;;  %v3336_v44 = vpack.c.bf16 %v383_v39, %v367_v38  ;;  %3365 = vmatpush1.bf16.msra.mxu0 %v3364_v32  ;;  %v369_v32 = vld [vmem:[#allocation6 + $0x690] sm:$0xff] }
  0x7d   :  { %v3366_v37 = vpack.c.bf16 %v388_v35, %v372_v34  ;;  %v387_v41 = vld [vmem:[#allocation6 + $0x720] sm:$0xff]  ;;  %v400_v43 = vld [vmem:[#allocation6 + $0x788] sm:$0xff]  ;;  %3335 = vmatprep.subr.bf16.mxu1 %v3334_v36  ;;  %v385_v33 = vld [vmem:[#allocation6 + $0x710] sm:$0xff]  ;;  %v3350_v35 = vpack.c.bf16 %v386_v26, %v370_v25 }
  0x7e   :  { %v103_v42 = vld [vmem:[#allocation12] sm:$0x1]  ;;  %v416_v46 = vld [vmem:[#allocation6 + $0x808] sm:$0xff]  ;;  %v3368_v49 = vpack.c.bf16 %v387_v41, %v371_v40  ;;  %v402_v38 = vld [vmem:[#allocation6 + $0x798] sm:$0xff] }
  0x7f   :  { %v113_v45 = vrot.slane %v103_v42, %v112_v31  ;;  %v404_v47 = vld [vmem:[#allocation6 + $0x7a8] sm:$0xff]  ;;  %105 = vst.msk [vmem:[#allocation2] sm:$0x1] %vm104_vm0, %v103_v42  ;;  %106 = vst.msk [vmem:[#allocation2 + $0x18] sm:$0x1] %vm104_vm0, %v103_v42  ;;  %v3338_v50 = vpack.c.bf16 %v416_v46, %v400_v43  ;;  %v399_v51 = vld [vmem:[#allocation6 + $0x780] sm:$0xff]  ;;  %3367 = vmatprep.subr.bf16.mxu0 %v3366_v37  ;;  %3337 = vmatpush1.bf16.msra.mxu1 %v3336_v44 }
  0x80   :  { %v420_v48 = vld [vmem:[#allocation6 + $0x828] sm:$0xff]  ;;  %107 = vst.msk [vmem:[#allocation2 + $0x11] sm:$0x1] %vm104_vm0, %v103_v42  ;;  %108 = vst.msk [vmem:[#allocation2 + $0x29] sm:$0x1] %vm104_vm0, %v103_v42  ;;  %v415_v52 = vld [vmem:[#allocation6 + $0x800] sm:$0xff]  ;;  %3369 = vmatpush1.bf16.msra.mxu0 %v3368_v49  ;;  %v3352_v43 = vpack.c.bf16 %v385_v33, %v369_v32 }
  0x81   :  { %116 = vst.msk [vmem:[#allocation2 + $0x1] sm:$0xff] %vm115_vm1, %v113_v45  ;;  %117 = vst.msk [vmem:[#allocation2 + $0x9] sm:$0xff] %vm115_vm1, %v113_v45  ;;  %v3370_v53 = vpack.c.bf16 %v420_v48, %v404_v47  ;;  %v403_v54 = vld [vmem:[#allocation6 + $0x7a0] sm:$0xff]  ;;  %v3340_v56 = vpack.c.bf16 %v415_v52, %v399_v51  ;;  %3339 = vmatprep.subr.bf16.mxu1 %v3338_v50  ;;  %v432_v58 = vld [vmem:[#allocation6 + $0x888] sm:$0xff] }
  0x82   :  { %118 = vst.msk [vmem:[#allocation2 + $0x19] sm:$0xff] %vm115_vm1, %v113_v45  ;;  %119 = vst.msk [vmem:[#allocation2 + $0x21] sm:$0xff] %vm115_vm1, %v113_v45  ;;  %v419_v55 = vld [vmem:[#allocation6 + $0x820] sm:$0xff]  ;;  %v436_v61 = vld [vmem:[#allocation6 + $0x8a8] sm:$0xff] }
  0x83   :  { %121 = vst.msk [vmem:[#allocation2 + $0x1] sm:$0xff] %vm120_vm2, %v113_v45  ;;  %122 = vst.msk [vmem:[#allocation2 + $0x9] sm:$0xff] %vm120_vm2, %v113_v45  ;;  %v3372_v57 = vpack.c.bf16 %v419_v55, %v403_v54  ;;  %3371 = vmatprep.subr.bf16.mxu0 %v3370_v53  ;;  %v312_v62 = vld [vmem:[#allocation6 + $0x4c8] sm:$0xff]  ;;  %3341 = vmatpush1.bf16.msra.mxu1 %v3340_v56  ;;  %v431_v1 = vld [vmem:[#allocation6 + $0x880] sm:$0xff] }
  0x84   :  { %123 = vst.msk [vmem:[#allocation2 + $0x19] sm:$0xff] %vm120_vm2, %v113_v45  ;;  %124 = vst.msk [vmem:[#allocation2 + $0x21] sm:$0xff] %vm120_vm2, %v113_v45  ;;  %v328_v63 = vld [vmem:[#allocation6 + $0x548] sm:$0xff]  ;;  %476 = vmatprep.subr.mxu1 %v432_v58  ;;  %v435_v3 = vld [vmem:[#allocation6 + $0x8a0] sm:$0xff] }
  0x85   :  { %3373 = vmatpush1.bf16.msra.mxu0 %v3372_v57  ;;  %v3390_v4 = vpack.c.bf16 %v328_v63, %v312_v62  ;;  %v311_v9 = vld [vmem:[#allocation6 + $0x4c0] sm:$0xff]  ;;  %v344_v15 = vld [vmem:[#allocation6 + $0x5c8] sm:$0xff]  ;;  %v418_v39 = vld [vmem:[#allocation6 + $0x818] sm:$0xff] }
  0x86   :  { %654 = vmatprep.subr.mxu0 %v436_v61  ;;  %v327_v10 = vld [vmem:[#allocation6 + $0x540] sm:$0xff]  ;;  %v360_v16 = vld [vmem:[#allocation6 + $0x648] sm:$0xff]  ;;  %v401_v46 = vld [vmem:[#allocation6 + $0x790] sm:$0xff]  ;;  %v3354_v47 = vpack.c.bf16 %v418_v39, %v402_v38 }
  0x87   :  { %477 = vmatpush1.msra.mxu1 %v431_v1  ;;  %v3392_v18 = vpack.c.bf16 %v327_v10, %v311_v9  ;;  %v343_v21 = vld [vmem:[#allocation6 + $0x5c0] sm:$0xff]  ;;  %v3394_v23 = vpack.c.bf16 %v360_v16, %v344_v15  ;;  %v376_v28 = vld [vmem:[#allocation6 + $0x6c8] sm:$0xff]  ;;  %v417_v49 = vld [vmem:[#allocation6 + $0x810] sm:$0xff] }
  0x88   :  { %3343 = vmatprep.subr.bf16.mxu1 %v3342_v2  ;;  %v359_v24 = vld [vmem:[#allocation6 + $0x640] sm:$0xff]  ;;  %v392_v29 = vld [vmem:[#allocation6 + $0x748] sm:$0xff]  ;;  %v3356_v52 = vpack.c.bf16 %v417_v49, %v401_v46  ;;  %v434_v55 = vld [vmem:[#allocation6 + $0x898] sm:$0xff] }
  0x89   :  { %655 = vmatpush1.msra.mxu0 %v435_v3  ;;  %v3396_v31 = vpack.c.bf16 %v359_v24, %v343_v21  ;;  %v375_v34 = vld [vmem:[#allocation6 + $0x6c0] sm:$0xff]  ;;  %v3398_v36 = vpack.c.bf16 %v392_v29, %v376_v28  ;;  %v408_v41 = vld [vmem:[#allocation6 + $0x7c8] sm:$0xff]  ;;  %v310_v57 = vld [vmem:[#allocation6 + $0x4b8] sm:$0xff] }
  0x8a   :  { %3391 = vmatprep.subr.bf16.mxu0 %v3390_v4  ;;  %v391_v37 = vld [vmem:[#allocation6 + $0x740] sm:$0xff]  ;;  %v424_v42 = vld [vmem:[#allocation6 + $0x848] sm:$0xff]  ;;  %v326_v58 = vld [vmem:[#allocation6 + $0x538] sm:$0xff] }
  0x8b   :  { %v3400_v44 = vpack.c.bf16 %v391_v37, %v375_v34  ;;  %v3402_v48 = vpack.c.bf16 %v424_v42, %v408_v41  ;;  %v407_v50 = vld [vmem:[#allocation6 + $0x7c0] sm:$0xff]  ;;  %v440_v56 = vld [vmem:[#allocation6 + $0x8c8] sm:$0xff]  ;;  %v309_v61 = vld [vmem:[#allocation6 + $0x4b0] sm:$0xff]  ;;  %v3374_v4 = vpack.c.bf16 %v326_v58, %v310_v57 }
  0x8c   :  { %v423_v51 = vld [vmem:[#allocation6 + $0x840] sm:$0xff]  ;;  %v316_v59 = vld [vmem:[#allocation6 + $0x4e8] sm:$0xff]  ;;  %v325_v62 = vld [vmem:[#allocation6 + $0x530] sm:$0xff] }
  0x8d   :  { %v3404_v53 = vpack.c.bf16 %v423_v51, %v407_v50  ;;  %v332_v60 = vld [vmem:[#allocation6 + $0x568] sm:$0xff]  ;;  %v315_v63 = vld [vmem:[#allocation6 + $0x4e0] sm:$0xff]  ;;  %v433_v2 = vld [vmem:[#allocation6 + $0x890] sm:$0xff]  ;;  %v3376_v8 = vpack.c.bf16 %v325_v62, %v309_v61 }
  0x8e   :  { %v331_v1 = vld [vmem:[#allocation6 + $0x560] sm:$0xff]  ;;  %v358_v7 = vld [vmem:[#allocation6 + $0x638] sm:$0xff]  ;;  %v348_v10 = vld [vmem:[#allocation6 + $0x5e8] sm:$0xff] }
  0x8f   :  { %v439_v3 = vld [vmem:[#allocation6 + $0x8c0] sm:$0xff]  ;;  %v3424_v9 = vpack.c.bf16 %v331_v1, %v315_v63  ;;  %v364_v11 = vld [vmem:[#allocation6 + $0x668] sm:$0xff]  ;;  %v390_v19 = vld [vmem:[#allocation6 + $0x738] sm:$0xff] }
  0x90   :  { %v347_v14 = vld [vmem:[#allocation6 + $0x5e0] sm:$0xff]  ;;  %v373_v24 = vld [vmem:[#allocation6 + $0x6b0] sm:$0xff]  ;;  %v422_v32 = vld [vmem:[#allocation6 + $0x838] sm:$0xff] }
  0x91   :  { %v363_v15 = vld [vmem:[#allocation6 + $0x660] sm:$0xff]  ;;  %v389_v25 = vld [vmem:[#allocation6 + $0x730] sm:$0xff]  ;;  %v314_v49 = vld [vmem:[#allocation6 + $0x4d8] sm:$0xff] }
  0x92   :  { %v3428_v21 = vpack.c.bf16 %v363_v15, %v347_v14  ;;  %v379_v26 = vld [vmem:[#allocation6 + $0x6e0] sm:$0xff]  ;;  %v3384_v33 = vpack.c.bf16 %v389_v25, %v373_v24  ;;  %v405_v37 = vld [vmem:[#allocation6 + $0x7b0] sm:$0xff]  ;;  %v330_v50 = vld [vmem:[#allocation6 + $0x558] sm:$0xff] }
  0x93   :  { %v395_v28 = vld [vmem:[#allocation6 + $0x760] sm:$0xff]  ;;  %v421_v38 = vld [vmem:[#allocation6 + $0x830] sm:$0xff]  ;;  %v155_v51 = vld [vmem:[#allocation6 + $0x8] sm:$0xff] }
  0x94   :  { %v3432_v34 = vpack.c.bf16 %v395_v28, %v379_v26  ;;  %v411_v39 = vld [vmem:[#allocation6 + $0x7e0] sm:$0xff]  ;;  %v437_v58 = vld [vmem:[#allocation6 + $0x8b0] sm:$0xff]  ;;  %v346_v62 = vld [vmem:[#allocation6 + $0x5d8] sm:$0xff] }
  0x95   :  { %v427_v41 = vld [vmem:[#allocation6 + $0x860] sm:$0xff]  ;;  %v362_v63 = vld [vmem:[#allocation6 + $0x658] sm:$0xff]  ;;  %v219_v15 = vld [vmem:[#allocation6 + $0x208] sm:$0xff] }
  0x96   :  { %v3436_v46 = vpack.c.bf16 %v427_v41, %v411_v39  ;;  %v170_v57 = vld [vmem:[#allocation6 + $0x80] sm:$0xff]  ;;  %v426_v24 = vld [vmem:[#allocation6 + $0x858] sm:$0xff]  ;;  %v251_v28 = vld [vmem:[#allocation6 + $0x308] sm:$0xff] }
  0x97   :  { %v283_v39 = vld [vmem:[#allocation6 + $0x408] sm:$0xff]  ;;  %v318_v41 = vld [vmem:[#allocation6 + $0x4f8] sm:$0xff] }
  0xe4   :  { %v134_v5 = vpop.permute.xlu0 %133  ;;  %v138_v6 = vpop.permute.xlu1 %137 }
  0xe5   :  { %146 = vst.msk [vmem:[#allocation2 + $0x1] sm:$0xff] %vm145_vm3, %v134_v5  ;;  %148 = vst.msk [vmem:[#allocation2 + $0x19] sm:$0xff] %vm145_vm3, %v138_v6  ;;  %v3422_v5 = vpack.c.bf16 %v332_v60, %v316_v59  ;;  %v342_v6 = vld [vmem:[#allocation6 + $0x5b8] sm:$0xff]  ;;  %v443_v59 = vld [vmem:[#allocation6 + $0x8e0] sm:$0xff]  ;;  %v3406_v60 = vpack.c.bf16 %v330_v50, %v314_v49 }
  0xe6   :  { %v3378_v16 = vpack.c.bf16 %v358_v7, %v342_v6  ;;  %v361_v6 = vld [vmem:[#allocation6 + $0x650] sm:$0xff]  ;;  %v186_v7 = vld [vmem:[#allocation6 + $0x100] sm:$0xff] }
  0xe7   :  { %v174_v49 = vld [vmem:[#allocation6 + $0xa0] sm:$0xff]  ;;  %v441_v50 = vld [vmem:[#allocation6 + $0x8d0] sm:$0xff] }
  0xe8   :  { %v136_v12 = vpop.permute.xlu0 %135  ;;  %v140_v13 = vpop.permute.xlu1 %139 }
  0xe9   :  { %147 = vst.msk [vmem:[#allocation2 + $0x9] sm:$0xff] %vm145_vm3, %v136_v12  ;;  %149 = vst.msk [vmem:[#allocation2 + $0x21] sm:$0xff] %vm145_vm3, %v140_v13  ;;  %v341_v12 = vld [vmem:[#allocation6 + $0x5b0] sm:$0xff] }
  0xea   :  { %v357_v13 = vld [vmem:[#allocation6 + $0x630] sm:$0xff] }
  0xeb   :  { %v3380_v20 = vpack.c.bf16 %v357_v13, %v341_v12  ;;  %v394_v12 = vld [vmem:[#allocation6 + $0x758] sm:$0xff] }
  0xec   :  { %v4222_v27 = vld [vmem:[#allocation2 + $0x1] sm:$0xff]  ;;  %v4236_v45 = vld [vmem:[#allocation2 + $0x19] sm:$0xff] }
  0xed   :  { %3176 = vmatmul.mubr.msk.f32.vlgmr.msra.gmra.mrb[0].mxu1 %vm447_vm4, %v4222_v27  ;;  %3184 = vmatmul.mubr.msk.f32.vlgmr.msra.gmra.mrb[0].mxu0 %vm447_vm4, %v4222_v27 }
  0xee   :  { %3345 = vmatpush1.bf16.msra.mxu1 %v3344_v17  ;;  %3393 = vmatpush1.bf16.msra.mxu0 %v3392_v18  ;;  %v3426_v17 = vpack.c.bf16 %v364_v11, %v348_v10  ;;  %v374_v18 = vld [vmem:[#allocation6 + $0x6b8] sm:$0xff] }
  0xef   :  { %3347 = vmatprep.subr.bf16.mxu1 %v3346_v22  ;;  %3395 = vmatprep.subr.bf16.mxu0 %v3394_v23  ;;  %v380_v22 = vld [vmem:[#allocation6 + $0x6e8] sm:$0xff]  ;;  %v3382_v29 = vpack.c.bf16 %v390_v19, %v374_v18  ;;  %v378_v11 = vld [vmem:[#allocation6 + $0x6d8] sm:$0xff]  ;;  %v393_v18 = vld [vmem:[#allocation6 + $0x750] sm:$0xff] }
  0xf0   :  { %530 = vmatprep.mubr.f32.mxu1 %v4074_v0  ;;  %708 = vmatprep.mubr.f32.mxu0 %v4074_v0  ;;  %v4230_v40 = vld [vmem:[#allocation2 + $0x9] sm:$0xff]  ;;  %v4244_v54 = vld [vmem:[#allocation2 + $0x21] sm:$0xff]  ;;  %v396_v23 = vld [vmem:[#allocation6 + $0x768] sm:$0xff] }
  0xf1   :  { %3177 = vmatmul.mubr.msk.f32.gmra.mrb[2].mxu1 %vm447_vm4, %v4230_v40  ;;  %3185 = vmatmul.mubr.msk.f32.gmra.mrb[2].mxu0 %vm447_vm4, %v4230_v40  ;;  %v218_v19 = vld [vmem:[#allocation6 + $0x200] sm:$0xff] }
  0xf2   :  { %3349 = vmatpush1.bf16.msra.mxu1 %v3348_v30  ;;  %3397 = vmatpush1.bf16.msra.mxu0 %v3396_v31  ;;  %v3430_v30 = vpack.c.bf16 %v396_v23, %v380_v22  ;;  %v406_v31 = vld [vmem:[#allocation6 + $0x7b8] sm:$0xff] }
  0xf3   :  { %3351 = vmatprep.subr.bf16.mxu1 %v3350_v35  ;;  %3399 = vmatprep.subr.bf16.mxu0 %v3398_v36  ;;  %v412_v35 = vld [vmem:[#allocation6 + $0x7e8] sm:$0xff]  ;;  %v3386_v42 = vpack.c.bf16 %v422_v32, %v406_v31  ;;  %v410_v23 = vld [vmem:[#allocation6 + $0x7d8] sm:$0xff]  ;;  %v425_v31 = vld [vmem:[#allocation6 + $0x850] sm:$0xff] }
  0xf4   :  { %536 = vmatprep.mubr.f32.mxu1 %v4074_v0  ;;  %714 = vmatprep.mubr.f32.mxu0 %v4074_v0  ;;  %v428_v36 = vld [vmem:[#allocation6 + $0x868] sm:$0xff]  ;;  %v250_v32 = vld [vmem:[#allocation6 + $0x300] sm:$0xff] }
  0xf5   :  { %3178 = vmatmul.mubr.msk.f32.gmra.mrb[4].mxu1 %vm447_vm4, %v4236_v45  ;;  %3186 = vmatmul.mubr.msk.f32.gmra.mrb[4].mxu0 %vm447_vm4, %v4236_v45 }
  0xf6   :  { %3353 = vmatpush1.bf16.msra.mxu1 %v3352_v43  ;;  %3401 = vmatpush1.bf16.msra.mxu0 %v3400_v44  ;;  %v3434_v43 = vpack.c.bf16 %v428_v36, %v412_v35  ;;  %v3388_v44 = vpack.c.bf16 %v421_v38, %v405_v37  ;;  %v442_v38 = vld [vmem:[#allocation6 + $0x8d8] sm:$0xff] }
  0xf7   :  { %3355 = vmatprep.subr.bf16.mxu1 %v3354_v47  ;;  %3403 = vmatprep.subr.bf16.mxu0 %v3402_v48  ;;  %v438_v47 = vld [vmem:[#allocation6 + $0x8b8] sm:$0xff]  ;;  %v444_v48 = vld [vmem:[#allocation6 + $0x8e8] sm:$0xff] }
  0xf8   :  { %542 = vmatprep.mubr.f32.mxu1 %v4074_v0  ;;  %720 = vmatprep.mubr.f32.mxu0 %v4074_v0 }
  0xf9   :  { %3179 = vmatmul.mubr.msk.f32.gmra.mrb[6].mxu1 %vm447_vm4, %v4244_v54  ;;  %3187 = vmatmul.mubr.msk.f32.gmra.mrb[6].mxu0 %vm447_vm4, %v4244_v54 }
  0xfa   :  { %3357 = vmatpush1.bf16.msra.mxu1 %v3356_v52  ;;  %3405 = vmatpush1.bf16.msra.mxu0 %v3404_v53  ;;  %v171_v52 = vld [vmem:[#allocation6 + $0x88] sm:$0xff]  ;;  %v313_v53 = vld [vmem:[#allocation6 + $0x4d0] sm:$0xff] }
  0xfb   :  { %565 = vmatprep.subr.mxu1 %v434_v55  ;;  %832 = vmatprep.subr.mxu0 %v440_v56  ;;  %v329_v55 = vld [vmem:[#allocation6 + $0x550] sm:$0xff]  ;;  %v154_v56 = vld [vmem:[#allocation6] sm:$0xff]  ;;  %v3454_v61 = vpack.c.bf16 %v171_v52, %v155_v51 }
  0xfc   :  { %613 = vmatprep.mubr.f32.mxu1 %v4074_v0  ;;  %880 = vmatprep.mubr.f32.mxu0 %v4074_v0  ;;  %v3408_v1 = vpack.c.bf16 %v329_v55, %v313_v53  ;;  %v282_v51 = vld [vmem:[#allocation6 + $0x400] sm:$0xff]  ;;  %v350_v55 = vld [vmem:[#allocation6 + $0x5f8] sm:$0xff] }
  0xfe   :  { %566 = vmatpush1.msra.mxu1 %v433_v2  ;;  %833 = vmatpush1.msra.mxu0 %v439_v3  ;;  %v3456_v2 = vpack.c.bf16 %v170_v57, %v154_v56  ;;  %v187_v3 = vld [vmem:[#allocation6 + $0x108] sm:$0xff]  ;;  %v366_v56 = vld [vmem:[#allocation6 + $0x678] sm:$0xff] }
  0xff   :  { %3180 = vmatmul.mubr.msk.f32.vlgmr.msra.gmra.mrb[8].mxu1 %vm447_vm4, %v4222_v27  ;;  %3375 = vmatprep.subr.bf16.mxu1 %v3374_v4  ;;  %v203_v4 = vld [vmem:[#allocation6 + $0x188] sm:$0xff] }
 0x100   :  { %3192 = vmatmul.mubr.msk.f32.vlgmr.msra.gmra.mrb[8].mxu0 %vm447_vm4, %v4222_v27  ;;  %3423 = vmatprep.subr.bf16.mxu0 %v3422_v5  ;;  %v345_v5 = vld [vmem:[#allocation6 + $0x5d0] sm:$0xff]  ;;  %v3458_v10 = vpack.c.bf16 %v203_v4, %v187_v3  ;;  %v3442_v3 = vpack.c.bf16 %v366_v56, %v350_v55  ;;  %v195_v56 = vld [vmem:[#allocation6 + $0x148] sm:$0xff] }
 0x101   :  { %3377 = vmatpush1.bf16.msra.mxu1 %v3376_v8  ;;  %3425 = vmatpush1.bf16.msra.mxu0 %v3424_v9  ;;  %v202_v8 = vld [vmem:[#allocation6 + $0x180] sm:$0xff]  ;;  %v3410_v9 = vpack.c.bf16 %v362_v63, %v346_v62  ;;  %v3412_v13 = vpack.c.bf16 %v361_v6, %v345_v5  ;;  %v365_v62 = vld [vmem:[#allocation6 + $0x670] sm:$0xff]  ;;  %v382_v5 = vld [vmem:[#allocation6 + $0x6f8] sm:$0xff] }
 0x102   :  { %619 = vmatprep.mubr.f32.mxu1 %v4074_v0  ;;  %886 = vmatprep.mubr.f32.mxu0 %v4074_v0  ;;  %v3460_v14 = vpack.c.bf16 %v202_v8, %v186_v7  ;;  %v190_v63 = vld [vmem:[#allocation6 + $0x120] sm:$0xff]  ;;  %v398_v6 = vld [vmem:[#allocation6 + $0x778] sm:$0xff] }
 0x103   :  { %3181 = vmatmul.mubr.msk.f32.gmra.mrb[10].mxu1 %vm447_vm4, %v4230_v40  ;;  %3379 = vmatprep.subr.bf16.mxu1 %v3378_v16  ;;  %v235_v16 = vld [vmem:[#allocation6 + $0x288] sm:$0xff] }
 0x104   :  { %3193 = vmatmul.mubr.msk.f32.gmra.mrb[10].mxu0 %vm447_vm4, %v4230_v40  ;;  %3427 = vmatprep.subr.bf16.mxu0 %v3426_v17  ;;  %v377_v17 = vld [vmem:[#allocation6 + $0x6d0] sm:$0xff]  ;;  %v3462_v22 = vpack.c.bf16 %v235_v16, %v219_v15  ;;  %v4312_v15 = vld [vmem:[#allocation2 + $0x8] sm:$0xff]  ;;  %v3446_v16 = vpack.c.bf16 %v398_v6, %v382_v5  ;;  %v227_v6 = vld [vmem:[#allocation6 + $0x248] sm:$0xff] }
 0x105   :  { %3381 = vmatpush1.bf16.msra.mxu1 %v3380_v20  ;;  %3429 = vmatpush1.bf16.msra.mxu0 %v3428_v21  ;;  %v234_v20 = vld [vmem:[#allocation6 + $0x280] sm:$0xff]  ;;  %v3414_v21 = vpack.c.bf16 %v394_v12, %v378_v11  ;;  %v3416_v25 = vpack.c.bf16 %v393_v18, %v377_v17  ;;  %v381_v11 = vld [vmem:[#allocation6 + $0x6f0] sm:$0xff]  ;;  %v414_v18 = vld [vmem:[#allocation6 + $0x7f8] sm:$0xff] }
 0x106   :  { %625 = vmatprep.mubr.f32.mxu1 %v4074_v0  ;;  %892 = vmatprep.mubr.f32.mxu0 %v4074_v0  ;;  %v3464_v26 = vpack.c.bf16 %v234_v20, %v218_v19  ;;  %v397_v12 = vld [vmem:[#allocation6 + $0x770] sm:$0xff]  ;;  %v430_v19 = vld [vmem:[#allocation6 + $0x878] sm:$0xff] }
 0x107   :  { %3182 = vmatmul.mubr.msk.f32.gmra.mrb[12].mxu1 %vm447_vm4, %v4236_v45  ;;  %3383 = vmatprep.subr.bf16.mxu1 %v3382_v29  ;;  %v267_v29 = vld [vmem:[#allocation6 + $0x388] sm:$0xff]  ;;  %v3448_v20 = vpack.c.bf16 %v397_v12, %v381_v11 }
 0x108   :  { %3194 = vmatmul.mubr.msk.f32.gmra.mrb[12].mxu0 %vm447_vm4, %v4236_v45  ;;  %3431 = vmatprep.subr.bf16.mxu0 %v3430_v30  ;;  %v409_v30 = vld [vmem:[#allocation6 + $0x7d0] sm:$0xff]  ;;  %v3466_v35 = vpack.c.bf16 %v267_v29, %v251_v28  ;;  %v270_v28 = vld [vmem:[#allocation6 + $0x3a0] sm:$0xff]  ;;  %v4320_v29 = vld [vmem:[#allocation2 + $0x18] sm:$0xff] }
 0x109   :  { %3385 = vmatpush1.bf16.msra.mxu1 %v3384_v33  ;;  %3433 = vmatpush1.bf16.msra.mxu0 %v3432_v34  ;;  %v266_v33 = vld [vmem:[#allocation6 + $0x380] sm:$0xff]  ;;  %v3418_v34 = vpack.c.bf16 %v426_v24, %v410_v23  ;;  %v3420_v36 = vpack.c.bf16 %v425_v31, %v409_v30  ;;  %v271_v23 = vld [vmem:[#allocation6 + $0x3a8] sm:$0xff]  ;;  %v413_v24 = vld [vmem:[#allocation6 + $0x7f0] sm:$0xff]  ;;  %v3450_v30 = vpack.c.bf16 %v430_v19, %v414_v18 }
 0x10a   :  { %631 = vmatprep.mubr.f32.mxu1 %v4074_v0  ;;  %898 = vmatprep.mubr.f32.mxu0 %v4074_v0  ;;  %v3468_v37 = vpack.c.bf16 %v266_v33, %v250_v32  ;;  %v259_v18 = vld [vmem:[#allocation6 + $0x348] sm:$0xff] }
 0x10b   :  { %3183 = vmatmul.mubr.msk.f32.gmra.mrb[14].mxu1 %vm447_vm4, %v4244_v54  ;;  %3387 = vmatprep.subr.bf16.mxu1 %v3386_v42  ;;  %v334_v42 = vld [vmem:[#allocation6 + $0x578] sm:$0xff]  ;;  %v275_v19 = vld [vmem:[#allocation6 + $0x3c8] sm:$0xff] }
 0x10c   :  { %3195 = vmatmul.mubr.msk.f32.gmra.mrb[14].mxu0 %vm447_vm4, %v4244_v54  ;;  %3435 = vmatprep.subr.bf16.mxu0 %v3434_v43  ;;  %v159_v43 = vld [vmem:[#allocation6 + $0x28] sm:$0xff]  ;;  %v3438_v52 = vpack.c.bf16 %v334_v42, %v318_v41  ;;  %v156_v42 = vld [vmem:[#allocation6 + $0x10] sm:$0xff] }
 0x10d   :  { %3389 = vmatpush1.bf16.msra.mxu1 %v3388_v44  ;;  %3437 = vmatpush1.bf16.msra.mxu0 %v3436_v46  ;;  %v175_v44 = vld [vmem:[#allocation6 + $0xa8] sm:$0xff]  ;;  %v317_v46 = vld [vmem:[#allocation6 + $0x4f0] sm:$0xff] }
 0x10e   :  { %743 = vmatprep.subr.mxu1 %v438_v47  ;;  %1010 = vmatprep.subr.mxu0 %v444_v48  ;;  %v333_v47 = vld [vmem:[#allocation6 + $0x570] sm:$0xff]  ;;  %v158_v48 = vld [vmem:[#allocation6 + $0x20] sm:$0xff]  ;;  %v3486_v53 = vpack.c.bf16 %v175_v44, %v159_v43  ;;  %v179_v41 = vld [vmem:[#allocation6 + $0xc8] sm:$0xff] }
 0x10f   :  { %791 = vmatprep.mubr.f32.mxu1 %v4074_v0  ;;  %1058 = vmatprep.mubr.f32.mxu0 %v4074_v0  ;;  %v3440_v57 = vpack.c.bf16 %v333_v47, %v317_v46  ;;  %v172_v43 = vld [vmem:[#allocation6 + $0x90] sm:$0xff]  ;;  %v162_v44 = vld [vmem:[#allocation6 + $0x40] sm:$0xff] }
 0x110   :  { %v178_v46 = vld [vmem:[#allocation6 + $0xc0] sm:$0xff]  ;;  %v445_v47 = vld [vmem:[#allocation6 + $0x8f0] sm:$0xff] }
 0x111   :  { %744 = vmatpush1.msra.mxu1 %v437_v58  ;;  %1011 = vmatpush1.msra.mxu0 %v443_v59  ;;  %v3488_v58 = vpack.c.bf16 %v174_v49, %v158_v48  ;;  %v191_v59 = vld [vmem:[#allocation6 + $0x128] sm:$0xff]  ;;  %v286_v48 = vld [vmem:[#allocation6 + $0x420] sm:$0xff]  ;;  %v3520_v55 = vpack.c.bf16 %v178_v46, %v162_v44  ;;  %v209_v44 = vld [vmem:[#allocation6 + $0x1b8] sm:$0xff] }
 0x112   :  { %3188 = vmatmul.mubr.msk.f32.vlgmr.msra.gmra.mrb[16].mxu1 %vm447_vm4, %v4222_v27  ;;  %3407 = vmatprep.subr.bf16.mxu1 %v3406_v60  ;;  %v207_v60 = vld [vmem:[#allocation6 + $0x1a8] sm:$0xff] }
 0x113   :  { %3200 = vmatmul.mubr.msk.f32.vlgmr.msra.gmra.mrb[16].mxu0 %vm447_vm4, %v4222_v27  ;;  %3455 = vmatprep.subr.bf16.mxu0 %v3454_v61  ;;  %v349_v61 = vld [vmem:[#allocation6 + $0x5f0] sm:$0xff]  ;;  %v3490_v4 = vpack.c.bf16 %v207_v60, %v191_v59  ;;  %v194_v60 = vld [vmem:[#allocation6 + $0x140] sm:$0xff] }
 0x114   :  { %3409 = vmatpush1.bf16.msra.mxu1 %v3408_v1  ;;  %3457 = vmatpush1.bf16.msra.mxu0 %v3456_v2  ;;  %v206_v1 = vld [vmem:[#allocation6 + $0x1a0] sm:$0xff]  ;;  %v4304_v2 = vld [vmem:[#allocation2] sm:$0xff]  ;;  %v3444_v7 = vpack.c.bf16 %v365_v62, %v349_v61 }
 0x115   :  { %797 = vmatprep.mubr.f32.mxu1 %v4074_v0  ;;  %1064 = vmatprep.mubr.f32.mxu0 %v4074_v0  ;;  %v3492_v8 = vpack.c.bf16 %v206_v1, %v190_v63  ;;  %v204_v59 = vld [vmem:[#allocation6 + $0x190] sm:$0xff]  ;;  %v210_v61 = vld [vmem:[#allocation6 + $0x1c0] sm:$0xff]  ;;  %v221_v1 = vld [vmem:[#allocation6 + $0x218] sm:$0xff] }
 0x116   :  { %3189 = vmatmul.mubr.msk.f32.gmra.mrb[18].mxu1 %vm447_vm4, %v4230_v40  ;;  %3411 = vmatprep.subr.bf16.mxu1 %v3410_v9  ;;  %v223_v9 = vld [vmem:[#allocation6 + $0x228] sm:$0xff]  ;;  %v3524_v5 = vpack.c.bf16 %v210_v61, %v194_v60 }
 0x117   :  { %3201 = vmatmul.mubr.msk.f32.gmra.mrb[18].mxu0 %vm447_vm4, %v4230_v40  ;;  %3459 = vmatprep.subr.bf16.mxu0 %v3458_v10  ;;  %v239_v10 = vld [vmem:[#allocation6 + $0x2a8] sm:$0xff] }
 0x118   :  { %3413 = vmatpush1.bf16.msra.mxu1 %v3412_v13  ;;  %3461 = vmatpush1.bf16.msra.mxu0 %v3460_v14  ;;  %v222_v13 = vld [vmem:[#allocation6 + $0x220] sm:$0xff]  ;;  %v3494_v17 = vpack.c.bf16 %v239_v10, %v223_v9  ;;  %v231_v61 = vld [vmem:[#allocation6 + $0x268] sm:$0xff] }
 0x119   :  { %803 = vmatprep.mubr.f32.mxu1 %v4074_v0  ;;  %1070 = vmatprep.mubr.f32.mxu0 %v4074_v0  ;;  %v238_v14 = vld [vmem:[#allocation6 + $0x2a0] sm:$0xff] }
 0x11a   :  { %3190 = vmatmul.mubr.msk.f32.gmra.mrb[20].mxu1 %vm447_vm4, %v4236_v45  ;;  %3415 = vmatprep.subr.bf16.mxu1 %v3414_v21  ;;  %v3496_v21 = vpack.c.bf16 %v238_v14, %v222_v13  ;;  %v226_v9 = vld [vmem:[#allocation6 + $0x240] sm:$0xff]  ;;  %v253_v13 = vld [vmem:[#allocation6 + $0x318] sm:$0xff] }
 0x11b   :  { %3202 = vmatmul.mubr.msk.f32.gmra.mrb[20].mxu0 %vm447_vm4, %v4236_v45  ;;  %3463 = vmatprep.subr.bf16.mxu0 %v3462_v22  ;;  %v255_v22 = vld [vmem:[#allocation6 + $0x328] sm:$0xff]  ;;  %v242_v10 = vld [vmem:[#allocation6 + $0x2c0] sm:$0xff]  ;;  %v269_v14 = vld [vmem:[#allocation6 + $0x398] sm:$0xff] }
 0x11c   :  { %3417 = vmatpush1.bf16.msra.mxu1 %v3416_v25  ;;  %3465 = vmatpush1.bf16.msra.mxu0 %v3464_v26  ;;  %v429_v25 = vld [vmem:[#allocation6 + $0x870] sm:$0xff]  ;;  %v254_v26 = vld [vmem:[#allocation6 + $0x320] sm:$0xff]  ;;  %v3498_v31 = vpack.c.bf16 %v271_v23, %v255_v22  ;;  %v3482_v23 = vpack.c.bf16 %v269_v14, %v253_v13 }
 0x11d   :  { %809 = vmatprep.mubr.f32.mxu1 %v4074_v0  ;;  %1076 = vmatprep.mubr.f32.mxu0 %v4074_v0  ;;  %v3452_v32 = vpack.c.bf16 %v429_v25, %v413_v24  ;;  %v3500_v33 = vpack.c.bf16 %v270_v28, %v254_v26  ;;  %v274_v22 = vld [vmem:[#allocation6 + $0x3c0] sm:$0xff]  ;;  %v3530_v24 = vpack.c.bf16 %v275_v19, %v259_v18  ;;  %v285_v28 = vld [vmem:[#allocation6 + $0x418] sm:$0xff]  ;;  %v272_v13 = vld [vmem:[#allocation6 + $0x3b0] sm:$0xff] }
 0x11e   :  { %3191 = vmatmul.mubr.msk.f32.gmra.mrb[22].mxu1 %vm447_vm4, %v4244_v54  ;;  %3419 = vmatprep.subr.bf16.mxu1 %v3418_v34  ;;  %v446_v34 = vld [vmem:[#allocation6 + $0x8f8] sm:$0xff]  ;;  %v262_v14 = vld [vmem:[#allocation6 + $0x360] sm:$0xff] }
 0x11f   :  { %3203 = vmatmul.mubr.msk.f32.gmra.mrb[22].mxu0 %vm447_vm4, %v4244_v54  ;;  %3467 = vmatprep.subr.bf16.mxu0 %v3466_v35  ;;  %v287_v35 = vld [vmem:[#allocation6 + $0x428] sm:$0xff] }
 0x120   :  { %3421 = vmatpush1.bf16.msra.mxu1 %v3420_v36  ;;  %3469 = vmatpush1.bf16.msra.mxu0 %v3468_v37  ;;  %v4328_v36 = vld [vmem:[#allocation2 + $0x20] sm:$0xff]  ;;  %v157_v37 = vld [vmem:[#allocation6 + $0x18] sm:$0xff] }
 0x121   :  { %921 = vmatprep.subr.mxu1 %v442_v38  ;;  %1200 = vmatprep.subr.mxu0 %v283_v39  ;;  %v173_v38 = vld [vmem:[#allocation6 + $0x98] sm:$0xff]  ;;  %v163_v39 = vld [vmem:[#allocation6 + $0x48] sm:$0xff] }
 0x122   :  { %969 = vmatprep.mubr.f32.mxu1 %v4074_v0  ;;  %1248 = vmatprep.mubr.f32.mxu0 %v4074_v0  ;;  %v3470_v49 = vpack.c.bf16 %v173_v38, %v157_v37  ;;  %v166_v37 = vld [vmem:[#allocation6 + $0x60] sm:$0xff] }
 0x123   :  { %v182_v38 = vld [vmem:[#allocation6 + $0xe0] sm:$0xff] }
 0x124   :  { %922 = vmatpush1.msra.mxu1 %v441_v50  ;;  %1201 = vmatpush1.msra.mxu0 %v282_v51  ;;  %v3518_v50 = vpack.c.bf16 %v179_v41, %v163_v39  ;;  %v189_v51 = vld [vmem:[#allocation6 + $0x118] sm:$0xff]  ;;  %v284_v39 = vld [vmem:[#allocation6 + $0x410] sm:$0xff] }
 0x125   :  { %3196 = vmatmul.mubr.msk.f32.vlgmr.msra.gmra.mrb[24].mxu1 %vm447_vm4, %v4222_v27  ;;  %3439 = vmatprep.subr.bf16.mxu1 %v3438_v52  ;;  %v205_v52 = vld [vmem:[#allocation6 + $0x198] sm:$0xff] }
 0x126   :  { %3208 = vmatmul.mubr.msk.f32.vlgmr.msra.gmra.mrb[24].mxu0 %vm447_vm4, %v4304_v2  ;;  %3487 = vmatprep.subr.bf16.mxu0 %v3486_v53  ;;  %v3472_v53 = vpack.c.bf16 %v172_v43, %v156_v42  ;;  %v3474_v62 = vpack.c.bf16 %v205_v52, %v189_v51  ;;  %v193_v43 = vld [vmem:[#allocation6 + $0x138] sm:$0xff]  ;;  %v208_v51 = vld [vmem:[#allocation6 + $0x1b0] sm:$0xff]  ;;  %v198_v52 = vld [vmem:[#allocation6 + $0x160] sm:$0xff] }
 0x127   :  { %3441 = vmatpush1.bf16.msra.mxu1 %v3440_v57  ;;  %3489 = vmatpush1.bf16.msra.mxu0 %v3488_v58  ;;  %v211_v57 = vld [vmem:[#allocation6 + $0x1c8] sm:$0xff]  ;;  %v188_v58 = vld [vmem:[#allocation6 + $0x110] sm:$0xff] }
 0x128   :  { %975 = vmatprep.mubr.f32.mxu1 %v4074_v0  ;;  %1254 = vmatprep.mubr.f32.mxu0 %v4074_v0  ;;  %v3522_v63 = vpack.c.bf16 %v211_v57, %v195_v56  ;;  %v225_v57 = vld [vmem:[#allocation6 + $0x238] sm:$0xff] }
 0x129   :  { %3197 = vmatmul.mubr.msk.f32.gmra.mrb[26].mxu1 %vm447_vm4, %v4230_v40  ;;  %3443 = vmatprep.subr.bf16.mxu1 %v3442_v3  ;;  %v237_v3 = vld [vmem:[#allocation6 + $0x298] sm:$0xff] }
 0x12a   :  { %3209 = vmatmul.mubr.msk.f32.gmra.mrb[26].mxu0 %vm447_vm4, %v4312_v15  ;;  %3491 = vmatprep.subr.bf16.mxu0 %v3490_v4  ;;  %v3476_v4 = vpack.c.bf16 %v204_v59, %v188_v58  ;;  %v3478_v11 = vpack.c.bf16 %v237_v3, %v221_v1  ;;  %v241_v58 = vld [vmem:[#allocation6 + $0x2b8] sm:$0xff]  ;;  %v240_v1 = vld [vmem:[#allocation6 + $0x2b0] sm:$0xff]  ;;  %v230_v3 = vld [vmem:[#allocation6 + $0x260] sm:$0xff] }
 0x12b   :  { %3445 = vmatpush1.bf16.msra.mxu1 %v3444_v7  ;;  %3493 = vmatpush1.bf16.msra.mxu0 %v3492_v8  ;;  %v243_v7 = vld [vmem:[#allocation6 + $0x2c8] sm:$0xff]  ;;  %v220_v8 = vld [vmem:[#allocation6 + $0x210] sm:$0xff] }
 0x12c   :  { %981 = vmatprep.mubr.f32.mxu1 %v4074_v0  ;;  %1260 = vmatprep.mubr.f32.mxu0 %v4074_v0  ;;  %v3526_v12 = vpack.c.bf16 %v243_v7, %v227_v6  ;;  %v257_v7 = vld [vmem:[#allocation6 + $0x338] sm:$0xff] }
 0x12d   :  { %3198 = vmatmul.mubr.msk.f32.gmra.mrb[28].mxu1 %vm447_vm4, %v4236_v45  ;;  %3447 = vmatprep.subr.bf16.mxu1 %v3446_v16 }
 0x12e   :  { %3210 = vmatmul.mubr.msk.f32.gmra.mrb[28].mxu0 %vm447_vm4, %v4320_v29  ;;  %3495 = vmatprep.subr.bf16.mxu0 %v3494_v17  ;;  %v3528_v17 = vpack.c.bf16 %v242_v10, %v226_v9  ;;  %v263_v10 = vld [vmem:[#allocation6 + $0x368] sm:$0xff] }
 0x12f   :  { %3449 = vmatpush1.bf16.msra.mxu1 %v3448_v20  ;;  %3497 = vmatpush1.bf16.msra.mxu0 %v3496_v21  ;;  %v252_v20 = vld [vmem:[#allocation6 + $0x310] sm:$0xff]  ;;  %v258_v21 = vld [vmem:[#allocation6 + $0x340] sm:$0xff] }
 0x130   :  { %987 = vmatprep.mubr.f32.mxu1 %v4074_v0  ;;  %1266 = vmatprep.mubr.f32.mxu0 %v4074_v0  ;;  %v3532_v26 = vpack.c.bf16 %v274_v22, %v258_v21  ;;  %v295_v21 = vld [vmem:[#allocation6 + $0x468] sm:$0xff]  ;;  %v165_v22 = vld [vmem:[#allocation6 + $0x58] sm:$0xff] }
 0x131   :  { %3199 = vmatmul.mubr.msk.f32.gmra.mrb[30].mxu1 %vm447_vm4, %v4244_v54  ;;  %3451 = vmatprep.subr.bf16.mxu1 %v3450_v30  ;;  %v161_v30 = vld [vmem:[#allocation6 + $0x38] sm:$0xff] }
 0x132   :  { %3211 = vmatmul.mubr.msk.f32.gmra.mrb[30].mxu0 %vm447_vm4, %v4328_v36  ;;  %3499 = vmatprep.subr.bf16.mxu0 %v3498_v31  ;;  %v177_v31 = vld [vmem:[#allocation6 + $0xb8] sm:$0xff] }
 0x133   :  { %3453 = vmatpush1.bf16.msra.mxu1 %v3452_v32  ;;  %3501 = vmatpush1.bf16.msra.mxu0 %v3500_v33  ;;  %v167_v32 = vld [vmem:[#allocation6 + $0x68] sm:$0xff]  ;;  %v3502_v41 = vpack.c.bf16 %v177_v31, %v161_v30  ;;  %v1917_v30 = vld [vmem:[#allocation6 + $0x980] sm:$0xff]  ;;  %v288_v31 = vld [vmem:[#allocation6 + $0x430] sm:$0xff] }
 0x134   :  { %1099 = vmatprep.subr.mxu1 %v446_v34  ;;  %1378 = vmatprep.subr.mxu0 %v287_v35  ;;  %v183_v33 = vld [vmem:[#allocation6 + $0xe8] sm:$0xff]  ;;  %v160_v34 = vld [vmem:[#allocation6 + $0x30] sm:$0xff] }
 0x135   :  { %1147 = vmatprep.mubr.f32.mxu1 %v4074_v0  ;;  %1426 = vmatprep.mubr.f32.mxu0 %v4074_v0  ;;  %v176_v35 = vld [vmem:[#allocation6 + $0xb0] sm:$0xff]  ;;  %v3550_v42 = vpack.c.bf16 %v183_v33, %v167_v32  ;;  %v294_v32 = vld [vmem:[#allocation6 + $0x460] sm:$0xff] }
 0x136   :  { %v3504_v46 = vpack.c.bf16 %v176_v35, %v160_v34  ;;  %v197_v35 = vld [vmem:[#allocation6 + $0x158] sm:$0xff] }
 0x137   :  { %1100 = vmatpush1.msra.mxu1 %v445_v47  ;;  %1379 = vmatpush1.msra.mxu0 %v286_v48  ;;  %v3552_v47 = vpack.c.bf16 %v182_v38, %v166_v37  ;;  %v199_v48 = vld [vmem:[#allocation6 + $0x168] sm:$0xff]  ;;  %v213_v37 = vld [vmem:[#allocation6 + $0x1d8] sm:$0xff] }
 0x138   :  { %3204 = vmatmul.mubr.msk.f32.vlgmr.msra.gmra.mrb[32].mxu1 %vm447_vm4, %v4222_v27  ;;  %3471 = vmatprep.subr.bf16.mxu1 %v3470_v49  ;;  %v236_v27 = vld [vmem:[#allocation6 + $0x290] sm:$0xff]  ;;  %v215_v49 = vld [vmem:[#allocation6 + $0x1e8] sm:$0xff] }
 0x139   :  { %3216 = vmatmul.mubr.msk.f32.vlgmr.msra.gmra.mrb[0].mxu0 %vm447_vm4, %v4304_v2  ;;  %3519 = vmatprep.subr.bf16.mxu0 %v3518_v50  ;;  %v3480_v16 = vpack.c.bf16 %v236_v27, %v220_v8  ;;  %v192_v50 = vld [vmem:[#allocation6 + $0x130] sm:$0xff]  ;;  %v3554_v56 = vpack.c.bf16 %v215_v49, %v199_v48  ;;  %v273_v8 = vld [vmem:[#allocation6 + $0x3b8] sm:$0xff] }
 0x13a   :  { %3473 = vmatpush1.bf16.msra.mxu1 %v3472_v53  ;;  %3521 = vmatpush1.bf16.msra.mxu0 %v3520_v55  ;;  %v214_v53 = vld [vmem:[#allocation6 + $0x1e0] sm:$0xff]  ;;  %v3506_v55 = vpack.c.bf16 %v209_v44, %v193_v43  ;;  %v3508_v59 = vpack.c.bf16 %v208_v51, %v192_v50  ;;  %v212_v43 = vld [vmem:[#allocation6 + $0x1d0] sm:$0xff]  ;;  %v229_v49 = vld [vmem:[#allocation6 + $0x258] sm:$0xff] }
 0x13b   :  { %1153 = vmatprep.mubr.f32.mxu1 %v4074_v0  ;;  %1432 = vmatprep.mubr.f32.mxu0 %v4074_v0  ;;  %v3556_v60 = vpack.c.bf16 %v214_v53, %v198_v52  ;;  %v1933_v44 = vld [vmem:[#allocation6 + $0xa00] sm:$0xff]  ;;  %v245_v50 = vld [vmem:[#allocation6 + $0x2d8] sm:$0xff]  ;;  %v1966_v53 = vld [vmem:[#allocation6 + $0xb08] sm:$0xff] }
 0x13c   :  { %3205 = vmatmul.mubr.msk.f32.gmra.mrb[34].mxu1 %vm447_vm4, %v4230_v40  ;;  %3475 = vmatprep.subr.bf16.mxu1 %v3474_v62  ;;  %v268_v40 = vld [vmem:[#allocation6 + $0x390] sm:$0xff]  ;;  %v247_v62 = vld [vmem:[#allocation6 + $0x2e8] sm:$0xff] }
 0x13d   :  { %3217 = vmatmul.mubr.msk.f32.gmra.mrb[2].mxu0 %vm447_vm4, %v4312_v15  ;;  %3523 = vmatprep.subr.bf16.mxu0 %v3522_v63  ;;  %v3484_v25 = vpack.c.bf16 %v268_v40, %v252_v20  ;;  %v224_v63 = vld [vmem:[#allocation6 + $0x230] sm:$0xff]  ;;  %v3558_v6 = vpack.c.bf16 %v247_v62, %v231_v61  ;;  %v289_v40 = vld [vmem:[#allocation6 + $0x438] sm:$0xff] }
 0x13e   :  { %3477 = vmatpush1.bf16.msra.mxu1 %v3476_v4  ;;  %3525 = vmatpush1.bf16.msra.mxu0 %v3524_v5  ;;  %v246_v4 = vld [vmem:[#allocation6 + $0x2e0] sm:$0xff]  ;;  %v3510_v5 = vpack.c.bf16 %v241_v58, %v225_v57  ;;  %v3512_v27 = vpack.c.bf16 %v240_v1, %v224_v63  ;;  %v244_v57 = vld [vmem:[#allocation6 + $0x2d0] sm:$0xff]  ;;  %v261_v62 = vld [vmem:[#allocation6 + $0x358] sm:$0xff] }
 0x13f   :  { %1159 = vmatprep.mubr.f32.mxu1 %v4074_v0  ;;  %1438 = vmatprep.mubr.f32.mxu0 %v4074_v0  ;;  %v3560_v9 = vpack.c.bf16 %v246_v4, %v230_v3  ;;  %v1965_v58 = vld [vmem:[#allocation6 + $0xb00] sm:$0xff]  ;;  %v277_v63 = vld [vmem:[#allocation6 + $0x3d8] sm:$0xff]  ;;  %v1998_v4 = vld [vmem:[#allocation6 + $0xc08] sm:$0xff] }
 0x140   :  { %3206 = vmatmul.mubr.msk.f32.gmra.mrb[36].mxu1 %vm447_vm4, %v4236_v45  ;;  %3479 = vmatprep.subr.bf16.mxu1 %v3478_v11  ;;  %v291_v45 = vld [vmem:[#allocation6 + $0x448] sm:$0xff] }
 0x141   :  { %3218 = vmatmul.mubr.msk.f32.gmra.mrb[4].mxu0 %vm447_vm4, %v4320_v29  ;;  %3527 = vmatprep.subr.bf16.mxu0 %v3526_v12  ;;  %v279_v11 = vld [vmem:[#allocation6 + $0x3e8] sm:$0xff]  ;;  %v256_v12 = vld [vmem:[#allocation6 + $0x330] sm:$0xff] }
 0x142   :  { %3481 = vmatpush1.bf16.msra.mxu1 %v3480_v16  ;;  %3529 = vmatpush1.bf16.msra.mxu0 %v3528_v17  ;;  %v278_v16 = vld [vmem:[#allocation6 + $0x3e0] sm:$0xff]  ;;  %v3514_v17 = vpack.c.bf16 %v273_v8, %v257_v7  ;;  %v3562_v18 = vpack.c.bf16 %v279_v11, %v263_v10  ;;  %v3516_v19 = vpack.c.bf16 %v272_v13, %v256_v12  ;;  %v276_v7 = vld [vmem:[#allocation6 + $0x3d0] sm:$0xff]  ;;  %v293_v13 = vld [vmem:[#allocation6 + $0x458] sm:$0xff] }
 0x143   :  { %1165 = vmatprep.mubr.f32.mxu1 %v4074_v0  ;;  %1444 = vmatprep.mubr.f32.mxu0 %v4074_v0  ;;  %v3564_v20 = vpack.c.bf16 %v278_v16, %v262_v14  ;;  %v1997_v8 = vld [vmem:[#allocation6 + $0xc00] sm:$0xff]  ;;  %v2030_v14 = vld [vmem:[#allocation6 + $0xd08] sm:$0xff]  ;;  %v169_v16 = vld [vmem:[#allocation6 + $0x78] sm:$0xff] }
 0x144   :  { %3207 = vmatmul.mubr.msk.f32.gmra.mrb[38].mxu1 %vm447_vm4, %v4244_v54  ;;  %3483 = vmatprep.subr.bf16.mxu1 %v3482_v23  ;;  %v290_v54 = vld [vmem:[#allocation6 + $0x440] sm:$0xff]  ;;  %v181_v23 = vld [vmem:[#allocation6 + $0xd8] sm:$0xff] }
 0x145   :  { %3219 = vmatmul.mubr.msk.f32.gmra.mrb[6].mxu0 %vm447_vm4, %v4328_v36  ;;  %3531 = vmatprep.subr.bf16.mxu0 %v3530_v24  ;;  %v1902_v24 = vld [vmem:[#allocation6 + $0x908] sm:$0xff]  ;;  %v3534_v33 = vpack.c.bf16 %v181_v23, %v165_v22  ;;  %v1921_v22 = vld [vmem:[#allocation6 + $0x9a0] sm:$0xff]  ;;  %v292_v23 = vld [vmem:[#allocation6 + $0x450] sm:$0xff] }
 0x146   :  { %3485 = vmatpush1.bf16.msra.mxu1 %v3484_v25  ;;  %3533 = vmatpush1.bf16.msra.mxu0 %v3532_v26  ;;  %v1918_v25 = vld [vmem:[#allocation6 + $0x988] sm:$0xff]  ;;  %v164_v26 = vld [vmem:[#allocation6 + $0x50] sm:$0xff] }
 0x147   :  { %1289 = vmatprep.subr.mxu1 %v285_v28  ;;  %1556 = vmatprep.subr.mxu0 %v291_v45  ;;  %v180_v28 = vld [vmem:[#allocation6 + $0xd0] sm:$0xff]  ;;  %v1901_v45 = vld [vmem:[#allocation6 + $0x900] sm:$0xff]  ;;  %v3582_v34 = vpack.c.bf16 %v1918_v25, %v1902_v24 }
 0x148   :  { %1337 = vmatprep.mubr.f32.mxu1 %v4074_v0  ;;  %1604 = vmatprep.mubr.f32.mxu0 %v4074_v0  ;;  %v3536_v38 = vpack.c.bf16 %v180_v28, %v164_v26  ;;  %v2029_v24 = vld [vmem:[#allocation6 + $0xd00] sm:$0xff]  ;;  %v201_v28 = vld [vmem:[#allocation6 + $0x178] sm:$0xff] }
 0x14a   :  { %1290 = vmatpush1.msra.mxu1 %v284_v39  ;;  %1557 = vmatpush1.msra.mxu0 %v290_v54  ;;  %v3584_v39 = vpack.c.bf16 %v1917_v30, %v1901_v45  ;;  %v1934_v54 = vld [vmem:[#allocation6 + $0xa08] sm:$0xff]  ;;  %v217_v45 = vld [vmem:[#allocation6 + $0x1f8] sm:$0xff] }
 0x14b   :  { %3212 = vmatmul.mubr.msk.f32.vlgmr.msra.gmra.mrb[8].mxu1 %vm447_vm4, %v4304_v2  ;;  %3503 = vmatprep.subr.bf16.mxu1 %v3502_v41  ;;  %v1950_v41 = vld [vmem:[#allocation6 + $0xa88] sm:$0xff] }
 0x14c   :  { %3224 = vmatmul.mubr.msk.f32.vlgmr.msra.gmra.mrb[8].mxu0 %vm447_vm4, %v4304_v2  ;;  %3551 = vmatprep.subr.bf16.mxu0 %v3550_v42  ;;  %v196_v42 = vld [vmem:[#allocation6 + $0x150] sm:$0xff]  ;;  %v3586_v48 = vpack.c.bf16 %v1950_v41, %v1934_v54  ;;  %v3570_v54 = vpack.c.bf16 %v217_v45, %v201_v28  ;;  %v1942_v45 = vld [vmem:[#allocation6 + $0xa48] sm:$0xff] }
 0x14d   :  { %3505 = vmatpush1.bf16.msra.mxu1 %v3504_v46  ;;  %3553 = vmatpush1.bf16.msra.mxu0 %v3552_v47  ;;  %v1949_v46 = vld [vmem:[#allocation6 + $0xa80] sm:$0xff]  ;;  %v3538_v47 = vpack.c.bf16 %v213_v37, %v197_v35  ;;  %v3540_v51 = vpack.c.bf16 %v212_v43, %v196_v42  ;;  %v216_v35 = vld [vmem:[#allocation6 + $0x1f0] sm:$0xff]  ;;  %v233_v42 = vld [vmem:[#allocation6 + $0x278] sm:$0xff] }
 0x14e   :  { %1343 = vmatprep.mubr.f32.mxu1 %v4074_v0  ;;  %1610 = vmatprep.mubr.f32.mxu0 %v4074_v0  ;;  %v3588_v52 = vpack.c.bf16 %v1949_v46, %v1933_v44  ;;  %v1937_v37 = vld [vmem:[#allocation6 + $0xa20] sm:$0xff]  ;;  %v249_v43 = vld [vmem:[#allocation6 + $0x2f8] sm:$0xff] }
 0x14f   :  { %3213 = vmatmul.mubr.msk.f32.gmra.mrb[10].mxu1 %vm447_vm4, %v4312_v15  ;;  %3507 = vmatprep.subr.bf16.mxu1 %v3506_v55  ;;  %v1982_v55 = vld [vmem:[#allocation6 + $0xb88] sm:$0xff] }
 0x150   :  { %3225 = vmatmul.mubr.msk.f32.gmra.mrb[10].mxu0 %vm447_vm4, %v4312_v15  ;;  %3555 = vmatprep.subr.bf16.mxu0 %v3554_v56  ;;  %v228_v56 = vld [vmem:[#allocation6 + $0x250] sm:$0xff]  ;;  %v3590_v61 = vpack.c.bf16 %v1982_v55, %v1966_v53  ;;  %v4416_v53 = vld [vmem:[#allocation2 + $0xa] sm:$0xff]  ;;  %v3574_v55 = vpack.c.bf16 %v249_v43, %v233_v42  ;;  %v1974_v43 = vld [vmem:[#allocation6 + $0xb48] sm:$0xff] }
 0x151   :  { %3509 = vmatpush1.bf16.msra.mxu1 %v3508_v59  ;;  %3557 = vmatpush1.bf16.msra.mxu0 %v3556_v60  ;;  %v1981_v59 = vld [vmem:[#allocation6 + $0xb80] sm:$0xff]  ;;  %v3542_v60 = vpack.c.bf16 %v245_v50, %v229_v49  ;;  %v3544_v1 = vpack.c.bf16 %v244_v57, %v228_v56  ;;  %v232_v49 = vld [vmem:[#allocation6 + $0x270] sm:$0xff]  ;;  %v265_v57 = vld [vmem:[#allocation6 + $0x378] sm:$0xff] }
 0x152   :  { %1349 = vmatprep.mubr.f32.mxu1 %v4074_v0  ;;  %1616 = vmatprep.mubr.f32.mxu0 %v4074_v0  ;;  %v3592_v3 = vpack.c.bf16 %v1981_v59, %v1965_v58  ;;  %v248_v50 = vld [vmem:[#allocation6 + $0x2f0] sm:$0xff]  ;;  %v281_v58 = vld [vmem:[#allocation6 + $0x3f8] sm:$0xff] }
 0x153   :  { %3214 = vmatmul.mubr.msk.f32.gmra.mrb[12].mxu1 %vm447_vm4, %v4320_v29  ;;  %3511 = vmatprep.subr.bf16.mxu1 %v3510_v5  ;;  %v2014_v5 = vld [vmem:[#allocation6 + $0xc88] sm:$0xff]  ;;  %v3576_v59 = vpack.c.bf16 %v248_v50, %v232_v49 }
 0x154   :  { %3226 = vmatmul.mubr.msk.f32.gmra.mrb[12].mxu0 %vm447_vm4, %v4320_v29  ;;  %3559 = vmatprep.subr.bf16.mxu0 %v3558_v6  ;;  %v260_v6 = vld [vmem:[#allocation6 + $0x350] sm:$0xff]  ;;  %v3594_v10 = vpack.c.bf16 %v2014_v5, %v1998_v4  ;;  %v2017_v4 = vld [vmem:[#allocation6 + $0xca0] sm:$0xff] }
 0x155   :  { %3513 = vmatpush1.bf16.msra.mxu1 %v3512_v27  ;;  %3561 = vmatpush1.bf16.msra.mxu0 %v3560_v9  ;;  %v2013_v27 = vld [vmem:[#allocation6 + $0xc80] sm:$0xff]  ;;  %v3546_v9 = vpack.c.bf16 %v277_v63, %v261_v62  ;;  %v3548_v11 = vpack.c.bf16 %v276_v7, %v260_v6  ;;  %v2018_v62 = vld [vmem:[#allocation6 + $0xca8] sm:$0xff]  ;;  %v264_v63 = vld [vmem:[#allocation6 + $0x370] sm:$0xff]  ;;  %v3578_v6 = vpack.c.bf16 %v281_v58, %v265_v57 }
 0x156   :  { %1355 = vmatprep.mubr.f32.mxu1 %v4074_v0  ;;  %1622 = vmatprep.mubr.f32.mxu0 %v4074_v0  ;;  %v3596_v12 = vpack.c.bf16 %v2013_v27, %v1997_v8  ;;  %v4424_v5 = vld [vmem:[#allocation2 + $0x1a] sm:$0xff] }
 0x157   :  { %3215 = vmatmul.mubr.msk.f32.gmra.mrb[14].mxu1 %vm447_vm4, %v4328_v36  ;;  %3515 = vmatprep.subr.bf16.mxu1 %v3514_v17  ;;  %v185_v17 = vld [vmem:[#allocation6 + $0xf8] sm:$0xff]  ;;  %v2006_v57 = vld [vmem:[#allocation6 + $0xc48] sm:$0xff] }
 0x158   :  { %3227 = vmatmul.mubr.msk.f32.gmra.mrb[14].mxu0 %vm447_vm4, %v4328_v36  ;;  %3563 = vmatprep.subr.bf16.mxu0 %v3562_v18  ;;  %v1906_v18 = vld [vmem:[#allocation6 + $0x928] sm:$0xff]  ;;  %v3566_v25 = vpack.c.bf16 %v185_v17, %v169_v16  ;;  %v1903_v17 = vld [vmem:[#allocation6 + $0x910] sm:$0xff] }
 0x159   :  { %3517 = vmatpush1.bf16.msra.mxu1 %v3516_v19  ;;  %3565 = vmatpush1.bf16.msra.mxu0 %v3564_v20  ;;  %v1922_v19 = vld [vmem:[#allocation6 + $0x9a8] sm:$0xff]  ;;  %v168_v20 = vld [vmem:[#allocation6 + $0x70] sm:$0xff] }
 0x15a   :  { %1467 = vmatprep.subr.mxu1 %v289_v40  ;;  %1734 = vmatprep.subr.mxu0 %v295_v21  ;;  %v184_v40 = vld [vmem:[#allocation6 + $0xf0] sm:$0xff]  ;;  %v1905_v21 = vld [vmem:[#allocation6 + $0x920] sm:$0xff]  ;;  %v3614_v26 = vpack.c.bf16 %v1922_v19, %v1906_v18  ;;  %v1926_v16 = vld [vmem:[#allocation6 + $0x9c8] sm:$0xff] }
 0x15b   :  { %1515 = vmatprep.mubr.f32.mxu1 %v4074_v0  ;;  %1782 = vmatprep.mubr.f32.mxu0 %v4074_v0  ;;  %v3568_v30 = vpack.c.bf16 %v184_v40, %v168_v20  ;;  %v1919_v18 = vld [vmem:[#allocation6 + $0x990] sm:$0xff]  ;;  %v1909_v19 = vld [vmem:[#allocation6 + $0x940] sm:$0xff]  ;;  %v2022_v58 = vld [vmem:[#allocation6 + $0xcc8] sm:$0xff] }
 0x15c   :  { %v1925_v20 = vld [vmem:[#allocation6 + $0x9c0] sm:$0xff]  ;;  %v296_v40 = vld [vmem:[#allocation6 + $0x470] sm:$0xff] }
 0x15d   :  { %1468 = vmatpush1.msra.mxu1 %v288_v31  ;;  %1735 = vmatpush1.msra.mxu0 %v294_v32  ;;  %v3616_v31 = vpack.c.bf16 %v1921_v22, %v1905_v21  ;;  %v1938_v32 = vld [vmem:[#allocation6 + $0xa28] sm:$0xff]  ;;  %v2033_v21 = vld [vmem:[#allocation6 + $0xd20] sm:$0xff]  ;;  %v3648_v28 = vpack.c.bf16 %v1925_v20, %v1909_v19  ;;  %v1956_v19 = vld [vmem:[#allocation6 + $0xab8] sm:$0xff] }
 0x15e   :  { %3220 = vmatmul.mubr.msk.f32.vlgmr.msra.gmra.mrb[16].mxu1 %vm447_vm4, %v4304_v2  ;;  %3535 = vmatprep.subr.bf16.mxu1 %v3534_v33  ;;  %v1954_v33 = vld [vmem:[#allocation6 + $0xaa8] sm:$0xff] }
 0x15f   :  { %3232 = vmatmul.mubr.msk.f32.vlgmr.msra.gmra.mrb[16].mxu0 %vm447_vm4, %v4304_v2  ;;  %3583 = vmatprep.subr.bf16.mxu0 %v3582_v34  ;;  %v200_v34 = vld [vmem:[#allocation6 + $0x170] sm:$0xff]  ;;  %v3618_v41 = vpack.c.bf16 %v1954_v33, %v1938_v32  ;;  %v1941_v33 = vld [vmem:[#allocation6 + $0xa40] sm:$0xff] }
 0x160   :  { %3537 = vmatpush1.bf16.msra.mxu1 %v3536_v38  ;;  %3585 = vmatpush1.bf16.msra.mxu0 %v3584_v39  ;;  %v1953_v38 = vld [vmem:[#allocation6 + $0xaa0] sm:$0xff]  ;;  %v4408_v39 = vld [vmem:[#allocation2 + $0x2] sm:$0xff]  ;;  %v3572_v44 = vpack.c.bf16 %v216_v35, %v200_v34 }
 0x161   :  { %1521 = vmatprep.mubr.f32.mxu1 %v4074_v0  ;;  %1788 = vmatprep.mubr.f32.mxu0 %v4074_v0  ;;  %v3620_v46 = vpack.c.bf16 %v1953_v38, %v1937_v37  ;;  %v1951_v32 = vld [vmem:[#allocation6 + $0xa90] sm:$0xff]  ;;  %v1957_v34 = vld [vmem:[#allocation6 + $0xac0] sm:$0xff]  ;;  %v1968_v38 = vld [vmem:[#allocation6 + $0xb18] sm:$0xff] }
 0x162   :  { %3221 = vmatmul.mubr.msk.f32.gmra.mrb[18].mxu1 %vm447_vm4, %v4312_v15  ;;  %3539 = vmatprep.subr.bf16.mxu1 %v3538_v47  ;;  %v1970_v47 = vld [vmem:[#allocation6 + $0xb28] sm:$0xff]  ;;  %v3652_v42 = vpack.c.bf16 %v1957_v34, %v1941_v33 }
 0x163   :  { %3233 = vmatmul.mubr.msk.f32.gmra.mrb[18].mxu0 %vm447_vm4, %v4312_v15  ;;  %3587 = vmatprep.subr.bf16.mxu0 %v3586_v48  ;;  %v1986_v48 = vld [vmem:[#allocation6 + $0xba8] sm:$0xff] }
 0x164   :  { %3541 = vmatpush1.bf16.msra.mxu1 %v3540_v51  ;;  %3589 = vmatpush1.bf16.msra.mxu0 %v3588_v52  ;;  %v1969_v51 = vld [vmem:[#allocation6 + $0xb20] sm:$0xff]  ;;  %v3622_v56 = vpack.c.bf16 %v1986_v48, %v1970_v47  ;;  %v1978_v34 = vld [vmem:[#allocation6 + $0xb68] sm:$0xff] }
 0x165   :  { %1527 = vmatprep.mubr.f32.mxu1 %v4074_v0  ;;  %1794 = vmatprep.mubr.f32.mxu0 %v4074_v0  ;;  %v1985_v52 = vld [vmem:[#allocation6 + $0xba0] sm:$0xff] }
 0x166   :  { %3222 = vmatmul.mubr.msk.f32.gmra.mrb[20].mxu1 %vm447_vm4, %v4320_v29  ;;  %3543 = vmatprep.subr.bf16.mxu1 %v3542_v60  ;;  %v3624_v60 = vpack.c.bf16 %v1985_v52, %v1969_v51  ;;  %v1973_v47 = vld [vmem:[#allocation6 + $0xb40] sm:$0xff]  ;;  %v2000_v51 = vld [vmem:[#allocation6 + $0xc18] sm:$0xff] }
 0x167   :  { %3234 = vmatmul.mubr.msk.f32.gmra.mrb[20].mxu0 %vm447_vm4, %v4320_v29  ;;  %3591 = vmatprep.subr.bf16.mxu0 %v3590_v61  ;;  %v2002_v61 = vld [vmem:[#allocation6 + $0xc28] sm:$0xff]  ;;  %v1989_v48 = vld [vmem:[#allocation6 + $0xbc0] sm:$0xff]  ;;  %v2016_v52 = vld [vmem:[#allocation6 + $0xc98] sm:$0xff] }
 0x168   :  { %3545 = vmatpush1.bf16.msra.mxu1 %v3544_v1  ;;  %3593 = vmatpush1.bf16.msra.mxu0 %v3592_v3  ;;  %v280_v1 = vld [vmem:[#allocation6 + $0x3f0] sm:$0xff]  ;;  %v2001_v3 = vld [vmem:[#allocation6 + $0xc20] sm:$0xff]  ;;  %v3626_v7 = vpack.c.bf16 %v2018_v62, %v2002_v61  ;;  %v3610_v62 = vpack.c.bf16 %v2016_v52, %v2000_v51 }
 0x169   :  { %1533 = vmatprep.mubr.f32.mxu1 %v4074_v0  ;;  %1800 = vmatprep.mubr.f32.mxu0 %v4074_v0  ;;  %v3580_v8 = vpack.c.bf16 %v280_v1, %v264_v63  ;;  %v3628_v27 = vpack.c.bf16 %v2017_v4, %v2001_v3  ;;  %v2021_v61 = vld [vmem:[#allocation6 + $0xcc0] sm:$0xff]  ;;  %v3658_v63 = vpack.c.bf16 %v2022_v58, %v2006_v57  ;;  %v2032_v4 = vld [vmem:[#allocation6 + $0xd18] sm:$0xff]  ;;  %v2019_v51 = vld [vmem:[#allocation6 + $0xcb0] sm:$0xff] }
 0x16a   :  { %3223 = vmatmul.mubr.msk.f32.gmra.mrb[22].mxu1 %vm447_vm4, %v4328_v36  ;;  %3547 = vmatprep.subr.bf16.mxu1 %v3546_v9  ;;  %v4430_v9 = vld [vmem:[#allocation2 + $0x22] sm:$0xff]  ;;  %v2009_v52 = vld [vmem:[#allocation6 + $0xc60] sm:$0xff] }
 0x16b   :  { %3235 = vmatmul.mubr.msk.f32.gmra.mrb[22].mxu0 %vm447_vm4, %v4328_v36  ;;  %3595 = vmatprep.subr.bf16.mxu0 %v3594_v10  ;;  %v297_v10 = vld [vmem:[#allocation6 + $0x478] sm:$0xff] }
 0x16c   :  { %3549 = vmatpush1.bf16.msra.mxu1 %v3548_v11  ;;  %3597 = vmatpush1.bf16.msra.mxu0 %v3596_v12  ;;  %v2034_v11 = vld [vmem:[#allocation6 + $0xd28] sm:$0xff]  ;;  %v1904_v12 = vld [vmem:[#allocation6 + $0x918] sm:$0xff] }
 0x16d   :  { %1645 = vmatprep.subr.mxu1 %v293_v13  ;;  %2073 = vmatprep.subr.mxu0 %v2030_v14  ;;  %v1920_v13 = vld [vmem:[#allocation6 + $0x998] sm:$0xff]  ;;  %v1910_v14 = vld [vmem:[#allocation6 + $0x948] sm:$0xff] }
 0x16e   :  { %1693 = vmatprep.mubr.f32.mxu1 %v4074_v0  ;;  %2121 = vmatprep.mubr.f32.mxu0 %v4074_v0  ;;  %v3598_v22 = vpack.c.bf16 %v1920_v13, %v1904_v12  ;;  %v1913_v12 = vld [vmem:[#allocation6 + $0x960] sm:$0xff] }
 0x16f   :  { %v1929_v13 = vld [vmem:[#allocation6 + $0x9e0] sm:$0xff] }
 0x170   :  { %1646 = vmatpush1.msra.mxu1 %v292_v23  ;;  %2074 = vmatpush1.msra.mxu0 %v2029_v24  ;;  %v3646_v23 = vpack.c.bf16 %v1926_v16, %v1910_v14  ;;  %v1936_v24 = vld [vmem:[#allocation6 + $0xa18] sm:$0xff]  ;;  %v2031_v14 = vld [vmem:[#allocation6 + $0xd10] sm:$0xff] }
 0x171   :  { %3228 = vmatmul.mubr.msk.f32.vlgmr.msra.gmra.mrb[24].mxu1 %vm447_vm4, %v4304_v2  ;;  %3567 = vmatprep.subr.bf16.mxu1 %v3566_v25  ;;  %v1952_v25 = vld [vmem:[#allocation6 + $0xa98] sm:$0xff] }
 0x172   :  { %3240 = vmatmul.mubr.msk.f32.vlgmr.msra.gmra.mrb[24].mxu0 %vm447_vm4, %v4408_v39  ;;  %3615 = vmatprep.subr.bf16.mxu0 %v3614_v26  ;;  %v3600_v26 = vpack.c.bf16 %v1919_v18, %v1903_v17  ;;  %v3602_v35 = vpack.c.bf16 %v1952_v25, %v1936_v24  ;;  %v1940_v18 = vld [vmem:[#allocation6 + $0xa38] sm:$0xff]  ;;  %v1955_v24 = vld [vmem:[#allocation6 + $0xab0] sm:$0xff]  ;;  %v1945_v25 = vld [vmem:[#allocation6 + $0xa60] sm:$0xff] }
 0x173   :  { %3569 = vmatpush1.bf16.msra.mxu1 %v3568_v30  ;;  %3617 = vmatpush1.bf16.msra.mxu0 %v3616_v31  ;;  %v1958_v30 = vld [vmem:[#allocation6 + $0xac8] sm:$0xff]  ;;  %v1935_v31 = vld [vmem:[#allocation6 + $0xa10] sm:$0xff] }
 0x174   :  { %1699 = vmatprep.mubr.f32.mxu1 %v4074_v0  ;;  %2127 = vmatprep.mubr.f32.mxu0 %v4074_v0  ;;  %v3650_v37 = vpack.c.bf16 %v1958_v30, %v1942_v45  ;;  %v1972_v30 = vld [vmem:[#allocation6 + $0xb38] sm:$0xff] }
 0x175   :  { %3229 = vmatmul.mubr.msk.f32.gmra.mrb[26].mxu1 %vm447_vm4, %v4312_v15  ;;  %3571 = vmatprep.subr.bf16.mxu1 %v3570_v54  ;;  %v1984_v54 = vld [vmem:[#allocation6 + $0xb98] sm:$0xff] }
 0x176   :  { %3241 = vmatmul.mubr.msk.f32.gmra.mrb[26].mxu0 %vm447_vm4, %v4416_v53  ;;  %3619 = vmatprep.subr.bf16.mxu0 %v3618_v41  ;;  %v3604_v41 = vpack.c.bf16 %v1951_v32, %v1935_v31  ;;  %v3606_v49 = vpack.c.bf16 %v1984_v54, %v1968_v38  ;;  %v1988_v31 = vld [vmem:[#allocation6 + $0xbb8] sm:$0xff]  ;;  %v1987_v38 = vld [vmem:[#allocation6 + $0xbb0] sm:$0xff]  ;;  %v1977_v54 = vld [vmem:[#allocation6 + $0xb60] sm:$0xff] }
 0x177   :  { %3573 = vmatpush1.bf16.msra.mxu1 %v3572_v44  ;;  %3621 = vmatpush1.bf16.msra.mxu0 %v3620_v46  ;;  %v1990_v44 = vld [vmem:[#allocation6 + $0xbc8] sm:$0xff]  ;;  %v1967_v46 = vld [vmem:[#allocation6 + $0xb10] sm:$0xff] }
 0x178   :  { %1705 = vmatprep.mubr.f32.mxu1 %v4074_v0  ;;  %2133 = vmatprep.mubr.f32.mxu0 %v4074_v0  ;;  %v3654_v50 = vpack.c.bf16 %v1990_v44, %v1974_v43  ;;  %v2004_v44 = vld [vmem:[#allocation6 + $0xc38] sm:$0xff] }
 0x179   :  { %3230 = vmatmul.mubr.msk.f32.gmra.mrb[28].mxu1 %vm447_vm4, %v4320_v29  ;;  %3575 = vmatprep.subr.bf16.mxu1 %v3574_v55 }
 0x17a   :  { %3242 = vmatmul.mubr.msk.f32.gmra.mrb[28].mxu0 %vm447_vm4, %v4424_v5  ;;  %3623 = vmatprep.subr.bf16.mxu0 %v3622_v56  ;;  %v3656_v56 = vpack.c.bf16 %v1989_v48, %v1973_v47  ;;  %v2010_v48 = vld [vmem:[#allocation6 + $0xc68] sm:$0xff] }
 0x17b   :  { %3577 = vmatpush1.bf16.msra.mxu1 %v3576_v59  ;;  %3625 = vmatpush1.bf16.msra.mxu0 %v3624_v60  ;;  %v1999_v59 = vld [vmem:[#allocation6 + $0xc10] sm:$0xff]  ;;  %v2005_v60 = vld [vmem:[#allocation6 + $0xc40] sm:$0xff] }
 0x17c   :  { %1711 = vmatprep.mubr.f32.mxu1 %v4074_v0  ;;  %2139 = vmatprep.mubr.f32.mxu0 %v4074_v0  ;;  %v3660_v3 = vpack.c.bf16 %v2021_v61, %v2005_v60  ;;  %v2042_v60 = vld [vmem:[#allocation6 + $0xd68] sm:$0xff]  ;;  %v1912_v61 = vld [vmem:[#allocation6 + $0x958] sm:$0xff] }
 0x17d   :  { %3231 = vmatmul.mubr.msk.f32.gmra.mrb[30].mxu1 %vm447_vm4, %v4328_v36  ;;  %3579 = vmatprep.subr.bf16.mxu1 %v3578_v6  ;;  %v1908_v6 = vld [vmem:[#allocation6 + $0x938] sm:$0xff] }
 0x17e   :  { %3243 = vmatmul.mubr.msk.f32.gmra.mrb[30].mxu0 %vm447_vm4, %v4430_v9  ;;  %3627 = vmatprep.subr.bf16.mxu0 %v3626_v7  ;;  %v1924_v7 = vld [vmem:[#allocation6 + $0x9b8] sm:$0xff] }
 0x17f   :  { %3581 = vmatpush1.bf16.msra.mxu1 %v3580_v8  ;;  %3629 = vmatpush1.bf16.msra.mxu0 %v3628_v27  ;;  %v1914_v8 = vld [vmem:[#allocation6 + $0x968] sm:$0xff]  ;;  %v3630_v16 = vpack.c.bf16 %v1924_v7, %v1908_v6  ;;  %v1944_v6 = vld [vmem:[#allocation6 + $0xa58] sm:$0xff] }
 0x180   :  { %1823 = vmatprep.subr.mxu1 %v297_v10  ;;  %2251 = vmatprep.subr.mxu0 %v2034_v11  ;;  %v1930_v27 = vld [vmem:[#allocation6 + $0x9e8] sm:$0xff]  ;;  %v1907_v10 = vld [vmem:[#allocation6 + $0x930] sm:$0xff]  ;;  %v1960_v7 = vld [vmem:[#allocation6 + $0xad8] sm:$0xff] }
 0x181   :  { %1871 = vmatprep.mubr.f32.mxu1 %v4074_v0  ;;  %2299 = vmatprep.mubr.f32.mxu0 %v4074_v0  ;;  %v1923_v11 = vld [vmem:[#allocation6 + $0x9b0] sm:$0xff]  ;;  %v3678_v17 = vpack.c.bf16 %v1930_v27, %v1914_v8 }
 0x182   :  { %v3632_v20 = vpack.c.bf16 %v1923_v11, %v1907_v10  ;;  %v1943_v27 = vld [vmem:[#allocation6 + $0xa50] sm:$0xff]  ;;  %v3666_v11 = vpack.c.bf16 %v1960_v7, %v1944_v6  ;;  %v3053_v6 = vld [vmem:[#allocation9 + $0x18] sm:$0xff]  ;;  %v3054_v7 = vld [vmem:[#allocation9 + $0x20] sm:$0xff] }
 0x183   :  { %1824 = vmatpush1.msra.mxu1 %v296_v40  ;;  %2252 = vmatpush1.msra.mxu0 %v2033_v21  ;;  %v3680_v40 = vpack.c.bf16 %v1929_v13, %v1913_v12  ;;  %v1946_v21 = vld [vmem:[#allocation6 + $0xa68] sm:$0xff]  ;;  %v1959_v10 = vld [vmem:[#allocation6 + $0xad0] sm:$0xff]  ;;  %v1976_v12 = vld [vmem:[#allocation6 + $0xb58] sm:$0xff] }
 0x184   :  { %3236 = vmatmul.mubr.msk.f32.vlgmr.msra.gmra.mrb[32].mxu1 %vm447_vm4, %v4304_v2  ;;  %3599 = vmatprep.subr.bf16.mxu1 %v3598_v22  ;;  %v1983_v2 = vld [vmem:[#allocation6 + $0xb90] sm:$0xff]  ;;  %v1962_v22 = vld [vmem:[#allocation6 + $0xae8] sm:$0xff]  ;;  %v1992_v13 = vld [vmem:[#allocation6 + $0xbd8] sm:$0xff] }
 0x185   :  { %3248 = vmatmul.mubr.msk.f32.vlgmr.msra.gmra.mrb[0].mxu0 %vm447_vm4, %v4408_v39  ;;  %3647 = vmatprep.subr.bf16.mxu0 %v3646_v23  ;;  %v3608_v55 = vpack.c.bf16 %v1983_v2, %v1967_v46  ;;  %v1939_v23 = vld [vmem:[#allocation6 + $0xa30] sm:$0xff]  ;;  %v3682_v45 = vpack.c.bf16 %v1962_v22, %v1946_v21  ;;  %v2020_v46 = vld [vmem:[#allocation6 + $0xcb8] sm:$0xff] }
 0x186   :  { %3601 = vmatpush1.bf16.msra.mxu1 %v3600_v26  ;;  %3649 = vmatpush1.bf16.msra.mxu0 %v3648_v28  ;;  %v1961_v26 = vld [vmem:[#allocation6 + $0xae0] sm:$0xff]  ;;  %v3634_v28 = vpack.c.bf16 %v1956_v19, %v1940_v18  ;;  %v3636_v32 = vpack.c.bf16 %v1955_v24, %v1939_v23  ;;  %v2008_v18 = vld [vmem:[#allocation6 + $0xc58] sm:$0xff]  ;;  %v2023_v21 = vld [vmem:[#allocation6 + $0xcd0] sm:$0xff] }
 0x187   :  { %1877 = vmatprep.mubr.f32.mxu1 %v4074_v0  ;;  %2305 = vmatprep.mubr.f32.mxu0 %v4074_v0  ;;  %v3684_v33 = vpack.c.bf16 %v1961_v26, %v1945_v25  ;;  %v2024_v19 = vld [vmem:[#allocation6 + $0xcd8] sm:$0xff] }
 0x188   :  { %3237 = vmatmul.mubr.msk.f32.gmra.mrb[34].mxu1 %vm447_vm4, %v4312_v15  ;;  %3603 = vmatprep.subr.bf16.mxu1 %v3602_v35  ;;  %v2015_v15 = vld [vmem:[#allocation6 + $0xc90] sm:$0xff]  ;;  %v1994_v35 = vld [vmem:[#allocation6 + $0xbe8] sm:$0xff]  ;;  %v3674_v22 = vpack.c.bf16 %v2024_v19, %v2008_v18  ;;  %v2040_v24 = vld [vmem:[#allocation6 + $0xd58] sm:$0xff] }
 0x189   :  { %3249 = vmatmul.mubr.msk.f32.gmra.mrb[2].mxu0 %vm447_vm4, %v4416_v53  ;;  %3651 = vmatprep.subr.bf16.mxu0 %v3650_v37  ;;  %v3612_v1 = vpack.c.bf16 %v2015_v15, %v1999_v59  ;;  %v1971_v37 = vld [vmem:[#allocation6 + $0xb30] sm:$0xff]  ;;  %v3686_v43 = vpack.c.bf16 %v1994_v35, %v1978_v34  ;;  %v2036_v15 = vld [vmem:[#allocation6 + $0xd38] sm:$0xff] }
 0x18a   :  { %3605 = vmatpush1.bf16.msra.mxu1 %v3604_v41  ;;  %3653 = vmatpush1.bf16.msra.mxu0 %v3652_v42  ;;  %v1993_v41 = vld [vmem:[#allocation6 + $0xbe0] sm:$0xff]  ;;  %v3638_v42 = vpack.c.bf16 %v1988_v31, %v1972_v30  ;;  %v3640_v2 = vpack.c.bf16 %v1987_v38, %v1971_v37  ;;  %v1916_v25 = vld [vmem:[#allocation6 + $0x978] sm:$0xff]  ;;  %v1947_v37 = vld [vmem:[#allocation6 + $0xa70] sm:$0xff] }
 0x18b   :  { %1883 = vmatprep.mubr.f32.mxu1 %v4074_v0  ;;  %2311 = vmatprep.mubr.f32.mxu0 %v4074_v0  ;;  %v3688_v47 = vpack.c.bf16 %v1993_v41, %v1977_v54  ;;  %v1932_v26 = vld [vmem:[#allocation6 + $0x9f8] sm:$0xff]  ;;  %v1963_v38 = vld [vmem:[#allocation6 + $0xaf0] sm:$0xff] }
 0x18c   :  { %3238 = vmatmul.mubr.msk.f32.gmra.mrb[36].mxu1 %vm447_vm4, %v4320_v29  ;;  %3607 = vmatprep.subr.bf16.mxu1 %v3606_v49  ;;  %v2038_v29 = vld [vmem:[#allocation6 + $0xd48] sm:$0xff]  ;;  %v1948_v30 = vld [vmem:[#allocation6 + $0xa78] sm:$0xff] }
 0x18d   :  { %3250 = vmatmul.mubr.msk.f32.gmra.mrb[4].mxu0 %vm447_vm4, %v4424_v5  ;;  %3655 = vmatprep.subr.bf16.mxu0 %v3654_v50  ;;  %v2026_v49 = vld [vmem:[#allocation6 + $0xce8] sm:$0xff]  ;;  %v2003_v50 = vld [vmem:[#allocation6 + $0xc30] sm:$0xff]  ;;  %v1964_v31 = vld [vmem:[#allocation6 + $0xaf8] sm:$0xff] }
 0x18e   :  { %3609 = vmatpush1.bf16.msra.mxu1 %v3608_v55  ;;  %3657 = vmatpush1.bf16.msra.mxu0 %v3656_v56  ;;  %v2025_v55 = vld [vmem:[#allocation6 + $0xce0] sm:$0xff]  ;;  %v3642_v56 = vpack.c.bf16 %v2020_v46, %v2004_v44  ;;  %v3690_v57 = vpack.c.bf16 %v2026_v49, %v2010_v48  ;;  %v3644_v58 = vpack.c.bf16 %v2019_v51, %v2003_v50  ;;  %v1980_v54 = vld [vmem:[#allocation6 + $0xb78] sm:$0xff]  ;;  %v1979_v44 = vld [vmem:[#allocation6 + $0xb70] sm:$0xff] }
 0x18f   :  { %1889 = vmatprep.mubr.f32.mxu1 %v4074_v0  ;;  %2317 = vmatprep.mubr.f32.mxu0 %v4074_v0  ;;  %v3692_v59 = vpack.c.bf16 %v2025_v55, %v2009_v52  ;;  %v3698_v35 = vpack.c.bf16 %v1964_v31, %v1948_v30  ;;  %v1996_v41 = vld [vmem:[#allocation6 + $0xbf8] sm:$0xff]  ;;  %v1995_v46 = vld [vmem:[#allocation6 + $0xbf0] sm:$0xff] }
 0x190   :  { %3239 = vmatmul.mubr.msk.f32.gmra.mrb[38].mxu1 %vm447_vm4, %v4328_v36  ;;  %3611 = vmatprep.subr.bf16.mxu1 %v3610_v62  ;;  %v2037_v36 = vld [vmem:[#allocation6 + $0xd40] sm:$0xff]  ;;  %v1928_v62 = vld [vmem:[#allocation6 + $0x9d8] sm:$0xff]  ;;  %v3704_v49 = vpack.c.bf16 %v1995_v46, %v1979_v44  ;;  %v2011_v52 = vld [vmem:[#allocation6 + $0xc70] sm:$0xff] }
 0x191   :  { %3251 = vmatmul.mubr.msk.f32.gmra.mrb[6].mxu0 %vm447_vm4, %v4430_v9  ;;  %3659 = vmatprep.subr.bf16.mxu0 %v3658_v63  ;;  %v1911_v63 = vld [vmem:[#allocation6 + $0x950] sm:$0xff] }
 0x192   :  { %3613 = vmatpush1.bf16.msra.mxu1 %v3612_v1  ;;  %3661 = vmatpush1.bf16.msra.mxu0 %v3660_v3  ;;  %v1927_v1 = vld [vmem:[#allocation6 + $0x9d0] sm:$0xff] }
 0x193   :  { %2162 = vmatprep.subr.mxu1 %v2032_v4  ;;  %2429 = vmatprep.subr.mxu0 %v2038_v29  ;;  %v2035_v3 = vld [vmem:[#allocation6 + $0xd30] sm:$0xff]  ;;  %v2041_v4 = vld [vmem:[#allocation6 + $0xd60] sm:$0xff]  ;;  %v3662_v29 = vpack.c.bf16 %v1928_v62, %v1912_v61  ;;  %v3664_v8 = vpack.c.bf16 %v1927_v1, %v1911_v63 }
 0x194   :  { %2210 = vmatprep.mubr.f32.mxu1 %v4074_v0  ;;  %2477 = vmatprep.mubr.f32.mxu0 %v4074_v0  ;;  %v2027_v55 = vld [vmem:[#allocation6 + $0xcf0] sm:$0xff]  ;;  %v3050_v1 = vld [vmem:[#allocation9] sm:$0xff] }
 0x195   :  { %v2043_v61 = vld [vmem:[#allocation6 + $0xd70] sm:$0xff] }
 0x196   :  { %2163 = vmatpush1.msra.mxu1 %v2031_v14  ;;  %2430 = vmatpush1.msra.mxu0 %v2037_v36  ;;  %v3668_v14 = vpack.c.bf16 %v1959_v10, %v1943_v27  ;;  %v1975_v36 = vld [vmem:[#allocation6 + $0xb50] sm:$0xff]  ;;  %v3057_v10 = vld [vmem:[#allocation9 + $0x38] sm:$0xff] }
 0x197   :  { %3244 = vmatmul.mubr.msk.f32.vlgmr.msra.gmra.mrb[8].mxu1 %vm447_vm4, %v4408_v39  ;;  %3631 = vmatprep.subr.bf16.mxu1 %v3630_v16  ;;  %v1991_v16 = vld [vmem:[#allocation6 + $0xbd0] sm:$0xff] }
 0x198   :  { %3256 = vmatmul.mubr.msk.f32.vlgmr.msra.gmra.mrb[8].mxu0 %vm447_vm4, %v4408_v39  ;;  %3679 = vmatprep.subr.bf16.mxu0 %v3678_v17  ;;  %v3670_v17 = vpack.c.bf16 %v1992_v13, %v1976_v12  ;;  %v3056_v27 = vld [vmem:[#allocation9 + $0x30] sm:$0xff]  ;;  %v3059_v12 = vld [vmem:[#allocation9 + $0x48] sm:$0xff] }
 0x199   :  { %3633 = vmatpush1.bf16.msra.mxu1 %v3632_v20  ;;  %3681 = vmatpush1.bf16.msra.mxu0 %v3680_v40  ;;  %v3672_v20 = vpack.c.bf16 %v1991_v16, %v1975_v36  ;;  %v2007_v40 = vld [vmem:[#allocation6 + $0xc50] sm:$0xff]  ;;  %v3061_v36 = vld [vmem:[#allocation9 + $0x58] sm:$0xff] }
 0x19a   :  { %2216 = vmatprep.mubr.f32.mxu1 %v4074_v0  ;;  %2483 = vmatprep.mubr.f32.mxu0 %v4074_v0  ;;  %v3676_v23 = vpack.c.bf16 %v2023_v21, %v2007_v40  ;;  %v3063_v18 = vld [vmem:[#allocation9 + $0x68] sm:$0xff]  ;;  %v3065_v40 = vld [vmem:[#allocation9 + $0x78] sm:$0xff] }
 0x19b   :  { %3245 = vmatmul.mubr.msk.f32.gmra.mrb[10].mxu1 %vm447_vm4, %v4416_v53  ;;  %3635 = vmatprep.subr.bf16.mxu1 %v3634_v28  ;;  %v1915_v28 = vld [vmem:[#allocation6 + $0x970] sm:$0xff] }
 0x19c   :  { %3257 = vmatmul.mubr.msk.f32.gmra.mrb[10].mxu0 %vm447_vm4, %v4416_v53  ;;  %3683 = vmatprep.subr.bf16.mxu0 %v3682_v45  ;;  %v1931_v45 = vld [vmem:[#allocation6 + $0x9f0] sm:$0xff] }
 0x19d   :  { %3637 = vmatpush1.bf16.msra.mxu1 %v3636_v32  ;;  %3685 = vmatpush1.bf16.msra.mxu0 %v3684_v33  ;;  %v2039_v32 = vld [vmem:[#allocation6 + $0xd50] sm:$0xff]  ;;  %v3694_v33 = vpack.c.bf16 %v1932_v26, %v1916_v25  ;;  %v3696_v34 = vpack.c.bf16 %v1931_v45, %v1915_v28 }
 0x19e   :  { %2222 = vmatprep.mubr.f32.mxu1 %v4074_v0  ;;  %2489 = vmatprep.mubr.f32.mxu0 %v4074_v0 }
 0x19f   :  { %3246 = vmatmul.mubr.msk.f32.gmra.mrb[12].mxu1 %vm447_vm4, %v4424_v5  ;;  %3639 = vmatprep.subr.bf16.mxu1 %v3638_v42  ;;  %v3700_v42 = vpack.c.bf16 %v1963_v38, %v1947_v37 }
 0x1a0   :  { %3258 = vmatmul.mubr.msk.f32.gmra.mrb[12].mxu0 %vm447_vm4, %v4424_v5  ;;  %3687 = vmatprep.subr.bf16.mxu0 %v3686_v43  ;;  %v3702_v43 = vpack.c.bf16 %v1996_v41, %v1980_v54 }
 0x1a1   :  { %3641 = vmatpush1.bf16.msra.mxu1 %v3640_v2  ;;  %3689 = vmatpush1.bf16.msra.mxu0 %v3688_v47  ;;  %v2012_v2 = vld [vmem:[#allocation6 + $0xc78] sm:$0xff] }
 0x1a2   :  { %2228 = vmatprep.mubr.f32.mxu1 %v4074_v0  ;;  %2495 = vmatprep.mubr.f32.mxu0 %v4074_v0  ;;  %v2028_v47 = vld [vmem:[#allocation6 + $0xcf8] sm:$0xff] }
 0x1a3   :  { %3247 = vmatmul.mubr.msk.f32.gmra.mrb[14].mxu1 %vm447_vm4, %v4430_v9  ;;  %3643 = vmatprep.subr.bf16.mxu1 %v3642_v56  ;;  %v3706_v51 = vpack.c.bf16 %v2028_v47, %v2012_v2 }
 0x1a4   :  { %3259 = vmatmul.mubr.msk.f32.gmra.mrb[14].mxu0 %vm447_vm4, %v4430_v9  ;;  %3691 = vmatprep.subr.bf16.mxu0 %v3690_v57  ;;  %v3708_v57 = vpack.c.bf16 %v2027_v55, %v2011_v52 }
 0x1a5   :  { %3645 = vmatpush1.bf16.msra.mxu1 %v3644_v58  ;;  %3693 = vmatpush1.bf16.msra.mxu0 %v3692_v59  ;;  %v2044_v59 = vld [vmem:[#allocation6 + $0xd78] sm:$0xff] }
 0x1a6   :  { %2340 = vmatprep.subr.mxu1 %v2036_v15  ;;  %2607 = vmatprep.subr.mxu0 %v2042_v60 }
 0x1a7   :  { %2388 = vmatprep.mubr.f32.mxu1 %v4074_v0  ;;  %2655 = vmatprep.mubr.f32.mxu0 %v4074_v0 }
 0x1a9   :  { %2341 = vmatpush1.msra.mxu1 %v2035_v3  ;;  %2608 = vmatpush1.msra.mxu0 %v2041_v4  ;;  %v3051_v3 = vld [vmem:[#allocation9 + $0x8] sm:$0xff] }
 0x1aa   :  { %3252 = vmatmul.mubr.msk.f32.vlgmr.msra.gmra.mrb[16].mxu1 %vm447_vm4, %v4408_v39  ;;  %3663 = vmatprep.subr.bf16.mxu1 %v3662_v29  ;;  %v3711_v4 = vpack.c.bf16 %v3051_v3, %v3050_v1  ;;  %v4076_v29 = vmov 0.0|0.0  }
 0x1ab   :  { %3264 = vmatmul.mubr.msk.f32.vlgmr.msra.gmra.mrb[16].mxu0 %vm447_vm4, %v4408_v39  ;;  %3665 = vmatpush1.bf16.msra.mxu1 %v3664_v8  ;;  %v3055_v8 = vld [vmem:[#allocation9 + $0x28] sm:$0xff] }
 0x1ac   :  { %2394 = vmatprep.mubr.f32.mxu1 %v4074_v0  ;;  %2661 = vmatprep.mubr.f32.mxu0 %v4074_v0 }
 0x1ad   :  { %3667 = vmatprep.subr.bf16.mxu1 %v3666_v11  ;;  %3710 = vmatprep.subr.bf16.mxu0 %v4076_v29  ;;  %v3058_v11 = vld [vmem:[#allocation9 + $0x40] sm:$0xff] }
 0x1ae   :  { %3253 = vmatmul.mubr.msk.f32.gmra.mrb[18].mxu1 %vm447_vm4, %v4416_v53  ;;  %3712 = vmatpush3.bf16.msra.mxu0 %v3711_v4  ;;  %v3723_v13 = vpack.c.bf16 %v3059_v12, %v3058_v11 }
 0x1af   :  { %3265 = vmatmul.mubr.msk.f32.gmra.mrb[18].mxu0 %vm447_vm4, %v4416_v53  ;;  %3669 = vmatpush1.bf16.msra.mxu1 %v3668_v14  ;;  %v3060_v14 = vld [vmem:[#allocation9 + $0x50] sm:$0xff] }
 0x1b0   :  { %2400 = vmatprep.mubr.f32.mxu1 %v4074_v0  ;;  %2667 = vmatprep.mubr.f32.mxu0 %v4074_v0  ;;  %v3726_v16 = vpack.c.bf16 %v3061_v36, %v3060_v14 }
 0x1b1   :  { %3671 = vmatprep.subr.bf16.mxu1 %v3670_v17  ;;  %3713 = vmatprep.subr.bf16.mxu0 %v4076_v29  ;;  %v3062_v17 = vld [vmem:[#allocation9 + $0x60] sm:$0xff] }
 0x1b2   :  { %3254 = vmatmul.mubr.msk.f32.gmra.mrb[20].mxu1 %vm447_vm4, %v4424_v5  ;;  %v3729_v19 = vpack.c.bf16 %v3063_v18, %v3062_v17 }
 0x1b3   :  { %3266 = vmatmul.mubr.msk.f32.gmra.mrb[20].mxu0 %vm447_vm4, %v4424_v5  ;;  %3673 = vmatpush1.bf16.msra.mxu1 %v3672_v20  ;;  %v3064_v20 = vld [vmem:[#allocation9 + $0x70] sm:$0xff] }
 0x1b4   :  { %2406 = vmatprep.mubr.f32.mxu1 %v4074_v0  ;;  %2673 = vmatprep.mubr.f32.mxu0 %v4074_v0  ;;  %v3732_v21 = vpack.c.bf16 %v3065_v40, %v3064_v20 }
 0x1b5   :  { %3675 = vmatprep.subr.bf16.mxu1 %v3674_v22 }
 0x1b6   :  { %3255 = vmatmul.mubr.msk.f32.gmra.mrb[22].mxu1 %vm447_vm4, %v4430_v9 }
 0x1b7   :  { %3267 = vmatmul.mubr.msk.f32.gmra.mrb[22].mxu0 %vm447_vm4, %v4430_v9  ;;  %3677 = vmatpush1.bf16.msra.mxu1 %v3676_v23  ;;  %v4549_v23 = vld [vmem:[#allocation8] ss:$0 sm:$0xff] }
 0x1b8   :  { %2518 = vmatprep.subr.mxu1 %v2040_v24  ;;  %2566 = vmatprep.mubr.f32.mxu1 %v4074_v0 }
 0x1b9   :  { %3323 = vmatprep.mubr.msk.f32.mxu0 %vm4077_vm5, %v4074_v0 }
 0x1bb   :  { %2519 = vmatpush1.msra.mxu1 %v2039_v32 }
 0x1bc   :  { %3260 = vmatmul.mubr.msk.f32.vlgmr.msra.gmra.mrb[24].mxu1 %vm447_vm4, %v4408_v39  ;;  %3695 = vmatprep.subr.bf16.mxu1 %v3694_v33 }
 0x1bd   :  { %3697 = vmatpush1.bf16.msra.mxu1 %v3696_v34  ;;  %2572 = vmatprep.mubr.f32.mxu1 %v4074_v0 }
 0x1be   :  { %3699 = vmatprep.subr.bf16.mxu1 %v3698_v35 }
 0x1c0   :  { %3261 = vmatmul.mubr.msk.f32.gmra.mrb[26].mxu1 %vm447_vm4, %v4416_v53  ;;  %v4514_v48 = vpop.f32.mrb[0].mxu1 }
 0x1c1   :  { %3701 = vmatpush1.bf16.msra.mxu1 %v3700_v42  ;;  %2578 = vmatprep.mubr.f32.mxu1 %v4074_v0  ;;  %v4517_v50 = vpop.f32.mrb[1].mxu1 }
 0x1c2   :  { %3703 = vmatprep.subr.bf16.mxu1 %v3702_v43 }
 0x1c4   :  { %3262 = vmatmul.mubr.msk.f32.gmra.mrb[28].mxu1 %vm447_vm4, %v4424_v5  ;;  %v4521_v56 = vpop.f32.mrb[2].mxu1 }
 0x1c5   :  { %3705 = vmatpush1.bf16.msra.mxu1 %v3704_v49  ;;  %2584 = vmatprep.mubr.f32.mxu1 %v4074_v0  ;;  %v4524_v58 = vpop.f32.mrb[3].mxu1 }
 0x1c6   :  { %3707 = vmatprep.subr.bf16.mxu1 %v3706_v51 }
 0x1c8   :  { %3263 = vmatmul.mubr.msk.f32.gmra.mrb[30].mxu1 %vm447_vm4, %v4430_v9  ;;  %v4528_v15 = vpop.f32.mrb[4].mxu1 }
 0x1c9   :  { %3709 = vmatpush1.bf16.msra.mxu1 %v3708_v57  ;;  %2744 = vmatprep.mubr.f32.mxu1 %v4074_v0  ;;  %v4531_v60 = vpop.f32.mrb[5].mxu1 }
 0x1ca   :  { %2696 = vmatprep.subr.mxu1 %v2044_v59 }
 0x1cc   :  { %v4533_v62 = vpop.f32.mrb[6].mxu1 }
 0x1cd   :  { %2697 = vmatpush1.msra.mxu1 %v2043_v61  ;;  %v4535_v63 = vpop.f32.mrb[7].mxu1 }
 0x1ce   :  { %3268 = vmatmul.mubr.msk.f32.vlgmr.msra.gmra.mrb[32].mxu1 %vm447_vm4, %v4408_v39  ;;  %v3052_v39 = vld [vmem:[#allocation9 + $0x10] sm:$0xff] }
 0x1cf   :  { %2750 = vmatprep.mubr.f32.mxu1 %v4074_v0 }
 0x1d2   :  { %3269 = vmatmul.mubr.msk.f32.gmra.mrb[34].mxu1 %vm447_vm4, %v4416_v53  ;;  %v3714_v53 = vpack.c.bf16 %v3053_v6, %v3052_v39 }
 0x1d3   :  { %2756 = vmatprep.mubr.f32.mxu1 %v4074_v0 }
 0x1d4   :  { %3715 = vmatpush3.bf16.msra.mxu0 %v3714_v53 }
 0x1d5   :  { %3716 = vmatprep.subr.bf16.mxu0 %v4076_v29 }
 0x1d6   :  { %3270 = vmatmul.mubr.msk.f32.gmra.mrb[36].mxu1 %vm447_vm4, %v4424_v5  ;;  %v3717_v5 = vpack.c.bf16 %v3055_v8, %v3054_v7 }
 0x1d7   :  { %2762 = vmatprep.mubr.f32.mxu1 %v4074_v0 }
 0x1d8   :  { %3718 = vmatpush3.bf16.msra.mxu0 %v3717_v5 }
 0x1d9   :  { %3719 = vmatprep.subr.bf16.mxu0 %v4076_v29 }
 0x1da   :  { %3271 = vmatmul.mubr.msk.f32.gmra.mrb[38].mxu1 %vm447_vm4, %v4430_v9  ;;  %v3720_v9 = vpack.c.bf16 %v3057_v10, %v3056_v27 }
 0x1dc   :  { %3721 = vmatpush3.bf16.msra.mxu0 %v3720_v9 }
 0x1dd   :  { %3722 = vmatprep.subr.bf16.mxu0 %v4076_v29 }
 0x1e0   :  { %3724 = vmatpush3.bf16.msra.mxu0 %v3723_v13 }
 0x1e1   :  { %3725 = vmatprep.subr.bf16.mxu0 %v4076_v29 }
 0x1e4   :  { %3727 = vmatpush3.bf16.msra.mxu0 %v3726_v16 }
 0x1e5   :  { %3728 = vmatprep.subr.bf16.mxu0 %v4076_v29 }
 0x1e8   :  { %3730 = vmatpush3.bf16.msra.mxu0 %v3729_v19 }
 0x1e9   :  { %3731 = vmatprep.subr.bf16.mxu0 %v4076_v29 }
 0x1ec   :  { %3733 = vmatpush3.bf16.msra.mxu0 %v3732_v21 }
 0x245   :  { %v2123_v22 = vpop.f32.mrb[24].mxu0 }
 0x246   :  { %v3734_v24 = vadd.f32 %v2123_v22, %v4514_v48  ;;  %v2125_v25 = vpop.f32.mrb[25].mxu0 }
 0x247   :  { %v3735_v26 = vadd.f32 %v2125_v25, %v4517_v50 }
 0x248   :  { %v2840_v28 = vadd.f32 %v3734_v24, %v4549_v23 }
 0x249   :  { %v2848_v45 = vadd.f32 %v3735_v26, %v4549_v23  ;;  %v2129_v30 = vpop.f32.mrb[26].mxu0 }
 0x24a   :  { %v2844_v31 = vmax.f32 %v2840_v28, 0.0  ;;  %v3736_v32 = vadd.f32 %v2129_v30, %v4521_v56  ;;  %v2131_v33 = vpop.f32.mrb[27].mxu0 }
 0x24b   :  { %v2852_v0 = vmax.f32 %v2848_v45, 0.0  ;;  %v3737_v34 = vadd.f32 %v2131_v33, %v4524_v58 }
 0x24c   :  { %v2841_v35 = vadd.f32 %v3736_v32, %v4549_v23 }
 0x24d   :  { %v2849_v37 = vadd.f32 %v3737_v34, %v4549_v23  ;;  %v2135_v38 = vpop.f32.mrb[28].mxu0  ;;  %v2856_v54 = vadd.f32 %v2852_v0, %v2844_v31 }
 0x24e   :  { %v2845_v41 = vmax.f32 %v2841_v35, 0.0  ;;  %v3738_v42 = vadd.f32 %v2135_v38, %v4528_v15  ;;  %v2137_v43 = vpop.f32.mrb[29].mxu0 }
 0x24f   :  { %v2853_v44 = vmax.f32 %v2849_v37, 0.0  ;;  %v3739_v46 = vadd.f32 %v2137_v43, %v4531_v60 }
 0x250   :  { %v2842_v2 = vadd.f32 %v3738_v42, %v4549_v23 }
 0x251   :  { %v2850_v47 = vadd.f32 %v3739_v46, %v4549_v23  ;;  %v2141_v48 = vpop.f32.mrb[30].mxu0  ;;  %v2857_v49 = vadd.f32 %v2853_v44, %v2845_v41 }
 0x252   :  { %v2846_v50 = vmax.f32 %v2842_v2, 0.0  ;;  %v3740_v51 = vadd.f32 %v2141_v48, %v4533_v62  ;;  %v2143_v52 = vpop.f32.mrb[31].mxu0 }
 0x253   :  { %v2854_v55 = vmax.f32 %v2850_v47, 0.0  ;;  %v3741_v56 = vadd.f32 %v2143_v52, %v4535_v63 }
 0x254   :  { %v2843_v57 = vadd.f32 %v3740_v51, %v4549_v23 }
 0x255   :  { %v2851_v58 = vadd.f32 %v3741_v56, %v4549_v23  ;;  %v2858_v59 = vadd.f32 %v2854_v55, %v2846_v50 }
 0x256   :  { %v2847_v15 = vmax.f32 %v2843_v57, 0.0 }
 0x257   :  { %v2855_v60 = vmax.f32 %v2851_v58, 0.0 }
 0x258   :  { %v2301_v61 = vpop.f32.mrb[0].mxu0 }
 0x259   :  { %v2303_v1 = vpop.f32.mrb[1].mxu0  ;;  %v4567_v3 = vadd.f32 %v2855_v60, %v2847_v15  ;;  %v2884_v9 = vadd.f32 %v4549_v23, %v2301_v61 }
 0x25a   :  { %v2896_v14 = vadd.f32 %v4549_v23, %v2303_v1 }
 0x25b   :  { %v2888_v40 = vmax.f32 %v2884_v9, 0.0 }
 0x25c   :  { %v2307_v4 = vpop.f32.mrb[2].mxu0  ;;  %v2900_v45 = vmax.f32 %v2896_v14, 0.0 }
 0x25d   :  { %v2309_v29 = vpop.f32.mrb[3].mxu0  ;;  %v2885_v21 = vadd.f32 %v4549_v23, %v2307_v4 }
 0x25e   :  { %v2897_v25 = vadd.f32 %v4549_v23, %v2309_v29 }
 0x25f   :  { %v2889_v38 = vmax.f32 %v2885_v21, 0.0 }
 0x260   :  { %v2313_v39 = vpop.f32.mrb[4].mxu0  ;;  %v2901_v43 = vmax.f32 %v2897_v25, 0.0 }
 0x261   :  { %v2315_v6 = vpop.f32.mrb[5].mxu0  ;;  %v2886_v34 = vadd.f32 %v4549_v23, %v2313_v39 }
 0x262   :  { %v2898_v2 = vadd.f32 %v4549_v23, %v2315_v6 }
 0x263   :  { %v2890_v52 = vmax.f32 %v2886_v34, 0.0 }
 0x264   :  { %v2319_v62 = vpop.f32.mrb[6].mxu0  ;;  %v2902_v1 = vmax.f32 %v2898_v2, 0.0 }
 0x265   :  { %v2321_v53 = vpop.f32.mrb[7].mxu0  ;;  %v2887_v57 = vadd.f32 %v4549_v23, %v2319_v62 }
 0x266   :  { %v2899_v4 = vadd.f32 %v4549_v23, %v2321_v53 }
 0x267   :  { %v2891_v39 = vmax.f32 %v2887_v57, 0.0 }
 0x268   :  { %v2903_v62 = vmax.f32 %v2899_v4, 0.0 }
 0x26a   :  { %v2212_v7 = vpop.f32.mrb[8].mxu1 }
 0x26b   :  { %v2860_v63 = vadd.f32 %v4549_v23, %v2212_v7  ;;  %v4570_v8 = vpop.f32.mrb[8].mxu0  ;;  %v2214_v5 = vpop.f32.mrb[9].mxu1 }
 0x26c   :  { %v2872_v27 = vadd.f32 %v4549_v23, %v2214_v5  ;;  %v4573_v10 = vpop.f32.mrb[9].mxu0  ;;  %v2932_v53 = vadd.f32 %v4549_v23, %v4570_v8 }
 0x26d   :  { %v2864_v11 = vmax.f32 %v2860_v63, 0.0 }
 0x26e   :  { %v2876_v12 = vmax.f32 %v2872_v27, 0.0  ;;  %v2218_v13 = vpop.f32.mrb[10].mxu1 }
 0x26f   :  { %v2868_v36 = vadd.f32 %v2864_v11, %v2856_v54  ;;  %v2861_v16 = vadd.f32 %v4549_v23, %v2218_v13  ;;  %v4578_v17 = vpop.f32.mrb[10].mxu0  ;;  %v2220_v18 = vpop.f32.mrb[11].mxu1 }
 0x270   :  { %v2873_v19 = vadd.f32 %v4549_v23, %v2220_v18  ;;  %v4581_v20 = vpop.f32.mrb[11].mxu0  ;;  %v2944_v18 = vadd.f32 %v4549_v23, %v4573_v10  ;;  %v2933_v8 = vadd.f32 %v4549_v23, %v4578_v17 }
 0x271   :  { %v2880_v22 = vadd.f32 %v2876_v12, %v2868_v36  ;;  %v2865_v24 = vmax.f32 %v2861_v16, 0.0 }
 0x272   :  { %v2877_v26 = vmax.f32 %v2873_v19, 0.0  ;;  %v2224_v28 = vpop.f32.mrb[12].mxu1 }
 0x273   :  { %v2892_v30 = vadd.f32 %v2888_v40, %v2880_v22  ;;  %v2869_v31 = vadd.f32 %v2865_v24, %v2857_v49  ;;  %v2862_v32 = vadd.f32 %v4549_v23, %v2224_v28  ;;  %v4586_v33 = vpop.f32.mrb[12].mxu0  ;;  %v2226_v0 = vpop.f32.mrb[13].mxu1 }
 0x274   :  { %v2874_v35 = vadd.f32 %v4549_v23, %v2226_v0  ;;  %v4590_v37 = vpop.f32.mrb[13].mxu0 }
 0x275   :  { %v2881_v54 = vadd.f32 %v2877_v26, %v2869_v31  ;;  %v2866_v41 = vmax.f32 %v2862_v32, 0.0  ;;  %v2904_v42 = vadd.f32 %v2900_v45, %v2892_v30  ;;  %v2936_v26 = vmax.f32 %v2932_v53, 0.0 }
 0x276   :  { %v2878_v44 = vmax.f32 %v2874_v35, 0.0  ;;  %v2230_v46 = vpop.f32.mrb[14].mxu1  ;;  %v2945_v30 = vadd.f32 %v4549_v23, %v4581_v20  ;;  %v2948_v32 = vmax.f32 %v2944_v18, 0.0 }
 0x277   :  { %v2893_v47 = vadd.f32 %v2889_v38, %v2881_v54  ;;  %v2870_v48 = vadd.f32 %v2866_v41, %v2858_v59  ;;  %v2863_v49 = vadd.f32 %v4549_v23, %v2230_v46  ;;  %v4594_v50 = vpop.f32.mrb[14].mxu0  ;;  %v2232_v51 = vpop.f32.mrb[15].mxu1  ;;  %v2934_v41 = vadd.f32 %v4549_v23, %v4586_v33 }
 0x278   :  { %v2875_v55 = vadd.f32 %v4549_v23, %v2232_v51  ;;  %v4597_v56 = vpop.f32.mrb[15].mxu0  ;;  %v2949_v2 = vmax.f32 %v2945_v30, 0.0 }
 0x279   :  { %v2882_v58 = vadd.f32 %v2878_v44, %v2870_v48  ;;  %v2867_v15 = vmax.f32 %v2863_v49, 0.0  ;;  %v2905_v60 = vadd.f32 %v2901_v43, %v2893_v47  ;;  %v2937_v43 = vmax.f32 %v2933_v8, 0.0 }
 0x27a   :  { %v2879_v61 = vmax.f32 %v2875_v55, 0.0  ;;  %v2946_v49 = vadd.f32 %v4549_v23, %v4590_v37  ;;  %v2947_v37 = vadd.f32 %v4549_v23, %v4597_v56 }
 0x27b   :  { %v2894_v59 = vadd.f32 %v2890_v52, %v2882_v58  ;;  %v2871_v29 = vadd.f32 %v2867_v15, %v4567_v3  ;;  %v2938_v58 = vmax.f32 %v2934_v41, 0.0 }
 0x27d   :  { %v2883_v6 = vadd.f32 %v2879_v61, %v2871_v29  ;;  %v2390_v7 = vpop.f32.mrb[16].mxu1  ;;  %v2906_v63 = vadd.f32 %v2902_v1, %v2894_v59  ;;  %v2935_v61 = vadd.f32 %v4549_v23, %v4594_v50  ;;  %v2951_v50 = vmax.f32 %v2947_v37, 0.0 }
 0x27e   :  { %v2908_v5 = vadd.f32 %v4549_v23, %v2390_v7  ;;  %v4603_v27 = vpop.f32.mrb[16].mxu0  ;;  %v2392_v9 = vpop.f32.mrb[17].mxu1 }
 0x27f   :  { %v2895_v11 = vadd.f32 %v2891_v39, %v2883_v6  ;;  %v2920_v12 = vadd.f32 %v4549_v23, %v2392_v9  ;;  %v4606_v13 = vpop.f32.mrb[17].mxu0  ;;  %v2950_v39 = vmax.f32 %v2946_v49, 0.0 }
 0x280   :  { %v2912_v14 = vmax.f32 %v2908_v5, 0.0  ;;  %v2939_v5 = vmax.f32 %v2935_v61, 0.0  ;;  %v2992_v56 = vadd.f32 %v4549_v23, %v4606_v13 }
 0x281   :  { %v2924_v3 = vmax.f32 %v2920_v12, 0.0  ;;  %v2396_v36 = vpop.f32.mrb[18].mxu1  ;;  %v2907_v16 = vadd.f32 %v2903_v62, %v2895_v11 }
 0x282   :  { %v2916_v19 = vadd.f32 %v2912_v14, %v2904_v42  ;;  %v2909_v40 = vadd.f32 %v4549_v23, %v2396_v36  ;;  %v4613_v21 = vpop.f32.mrb[18].mxu0  ;;  %v2398_v22 = vpop.f32.mrb[19].mxu1  ;;  %v2980_v14 = vadd.f32 %v4549_v23, %v4603_v27 }
 0x283   :  { %v2921_v24 = vadd.f32 %v4549_v23, %v2398_v22  ;;  %v4616_v25 = vpop.f32.mrb[19].mxu0 }
 0x284   :  { %v2928_v28 = vadd.f32 %v2924_v3, %v2916_v19  ;;  %v2913_v45 = vmax.f32 %v2909_v40, 0.0  ;;  %v2984_v8 = vmax.f32 %v2980_v14, 0.0  ;;  %v2993_v30 = vadd.f32 %v4549_v23, %v4616_v25 }
 0x285   :  { %v2925_v10 = vmax.f32 %v2921_v24, 0.0  ;;  %v2402_v31 = vpop.f32.mrb[20].mxu1 }
 0x286   :  { %v2940_v0 = vadd.f32 %v2936_v26, %v2928_v28  ;;  %v2917_v34 = vadd.f32 %v2913_v45, %v2905_v60  ;;  %v2910_v35 = vadd.f32 %v4549_v23, %v2402_v31  ;;  %v2669_v38 = vpop.f32.mrb[20].mxu0  ;;  %v2404_v54 = vpop.f32.mrb[21].mxu1  ;;  %v2981_v28 = vadd.f32 %v4549_v23, %v4613_v21 }
 0x287   :  { %v2922_v42 = vadd.f32 %v4549_v23, %v2404_v54  ;;  %v4626_v17 = vpop.f32.mrb[21].mxu0  ;;  %v2982_v54 = vadd.f32 %v4549_v23, %v2669_v38 }
 0x288   :  { %v2929_v44 = vadd.f32 %v2925_v10, %v2917_v34  ;;  %v2914_v46 = vmax.f32 %v2910_v35, 0.0  ;;  %v2952_v20 = vadd.f32 %v2948_v32, %v2940_v0  ;;  %v2996_v32 = vmax.f32 %v2992_v56, 0.0 }
 0x289   :  { %v2926_v47 = vmax.f32 %v2922_v42, 0.0  ;;  %v2408_v48 = vpop.f32.mrb[22].mxu1  ;;  %v2985_v42 = vmax.f32 %v2981_v28, 0.0  ;;  %v2994_v25 = vadd.f32 %v4549_v23, %v4626_v17 }
 0x28a   :  { %v2941_v51 = vadd.f32 %v2937_v43, %v2929_v44  ;;  %v2918_v52 = vadd.f32 %v2914_v46, %v2906_v63  ;;  %v2911_v55 = vadd.f32 %v4549_v23, %v2408_v48  ;;  %v2675_v57 = vpop.f32.mrb[22].mxu0  ;;  %v2410_v33 = vpop.f32.mrb[23].mxu1  ;;  %v2997_v46 = vmax.f32 %v2993_v30, 0.0 }
 0x28b   :  { %v2923_v15 = vadd.f32 %v4549_v23, %v2410_v33  ;;  %v4632_v60 = vpop.f32.mrb[23].mxu0 }
 0x28c   :  { %v2930_v1 = vadd.f32 %v2926_v47, %v2918_v52  ;;  %v2915_v4 = vmax.f32 %v2911_v55, 0.0  ;;  %v2953_v59 = vadd.f32 %v2949_v2, %v2941_v51  ;;  %v2986_v52 = vmax.f32 %v2982_v54, 0.0 }
 0x28d   :  { %v2927_v29 = vmax.f32 %v2923_v15, 0.0  ;;  %v2983_v55 = vadd.f32 %v4549_v23, %v2675_v57 }
 0x28e   :  { %v2942_v6 = vadd.f32 %v2938_v58, %v2930_v1  ;;  %v2919_v7 = vadd.f32 %v2915_v4, %v2907_v16  ;;  %v2998_v1 = vmax.f32 %v2994_v25, 0.0  ;;  %v2995_v4 = vadd.f32 %v4549_v23, %v4632_v60 }
 0x28f   :  { %v2568_v63 = vpop.f32.mrb[24].mxu1 }
 0x290   :  { %v2931_v9 = vadd.f32 %v2927_v29, %v2919_v7  ;;  %v2956_v62 = vadd.f32 %v4549_v23, %v2568_v63  ;;  %v2570_v11 = vpop.f32.mrb[25].mxu1  ;;  %v2954_v12 = vadd.f32 %v2950_v39, %v2942_v6  ;;  %v2987_v39 = vmax.f32 %v2983_v55, 0.0 }
 0x291   :  { %v2968_v53 = vadd.f32 %v4549_v23, %v2570_v11  ;;  %v2999_v57 = vmax.f32 %v2995_v4, 0.0 }
 0x292   :  { %v2943_v3 = vadd.f32 %v2939_v5, %v2931_v9  ;;  %v2960_v36 = vmax.f32 %v2956_v62, 0.0 }
 0x293   :  { %v2972_v18 = vmax.f32 %v2968_v53, 0.0  ;;  %v2574_v19 = vpop.f32.mrb[26].mxu1 }
 0x294   :  { %v2964_v16 = vadd.f32 %v2960_v36, %v2952_v20  ;;  %v2957_v40 = vadd.f32 %v4549_v23, %v2574_v19  ;;  %v2576_v22 = vpop.f32.mrb[27].mxu1  ;;  %v2955_v24 = vadd.f32 %v2951_v50, %v2943_v3 }
 0x295   :  { %v2969_v26 = vadd.f32 %v4549_v23, %v2576_v22 }
 0x296   :  { %v2976_v45 = vadd.f32 %v2972_v18, %v2964_v16  ;;  %v2961_v27 = vmax.f32 %v2957_v40, 0.0 }
 0x297   :  { %v2973_v10 = vmax.f32 %v2969_v26, 0.0  ;;  %v2580_v31 = vpop.f32.mrb[28].mxu1 }
 0x298   :  { %v2988_v13 = vadd.f32 %v2984_v8, %v2976_v45  ;;  %v2965_v0 = vadd.f32 %v2961_v27, %v2953_v59  ;;  %v2958_v34 = vadd.f32 %v4549_v23, %v2580_v31  ;;  %v2582_v35 = vpop.f32.mrb[29].mxu1 }
 0x299   :  { %v2970_v41 = vadd.f32 %v4549_v23, %v2582_v35 }
 0x29a   :  { %v2977_v43 = vadd.f32 %v2973_v10, %v2965_v0  ;;  %v2962_v21 = vmax.f32 %v2958_v34, 0.0  ;;  %v3000_v44 = vadd.f32 %v2996_v32, %v2988_v13 }
 0x29b   :  { %v2974_v20 = vmax.f32 %v2970_v41, 0.0  ;;  %v2586_v2 = vpop.f32.mrb[30].mxu1 }
 0x29c   :  { %v2989_v47 = vadd.f32 %v2985_v42, %v2977_v43  ;;  %v2966_v48 = vadd.f32 %v2962_v21, %v2954_v12  ;;  %v2959_v49 = vadd.f32 %v4549_v23, %v2586_v2  ;;  %v2588_v51 = vpop.f32.mrb[31].mxu1 }
 0x29d   :  { %v2971_v38 = vadd.f32 %v4549_v23, %v2588_v51 }
 0x29e   :  { %v2978_v33 = vadd.f32 %v2974_v20, %v2966_v48  ;;  %v2963_v58 = vmax.f32 %v2959_v49, 0.0  ;;  %v3001_v15 = vadd.f32 %v2997_v46, %v2989_v47 }
 0x29f   :  { %v2975_v61 = vmax.f32 %v2971_v38, 0.0 }
 0x2a0   :  { %v2990_v59 = vadd.f32 %v2986_v52, %v2978_v33  ;;  %v2967_v17 = vadd.f32 %v2963_v58, %v2955_v24 }
 0x2a1   :  { %v2746_v29 = vpop.f32.mrb[32].mxu1 }
 0x2a2   :  { %v2979_v37 = vadd.f32 %v2975_v61, %v2967_v17  ;;  %v3004_v6 = vadd.f32 %v4549_v23, %v2746_v29  ;;  %v2748_v7 = vpop.f32.mrb[33].mxu1  ;;  %v3002_v63 = vadd.f32 %v2998_v1, %v2990_v59 }
 0x2a3   :  { %v3016_v5 = vadd.f32 %v4549_v23, %v2748_v7 }
 0x2a4   :  { %v2991_v9 = vadd.f32 %v2987_v39, %v2979_v37  ;;  %v3008_v62 = vmax.f32 %v3004_v6, 0.0 }
 0x2a5   :  { %v3020_v11 = vmax.f32 %v3016_v5, 0.0  ;;  %v2752_v12 = vpop.f32.mrb[34].mxu1 }
 0x2a6   :  { %v3012_v53 = vadd.f32 %v3008_v62, %v3000_v44  ;;  %v3005_v50 = vadd.f32 %v4549_v23, %v2752_v12  ;;  %v2754_v60 = vpop.f32.mrb[35].mxu1  ;;  %v3003_v14 = vadd.f32 %v2999_v57, %v2991_v9 }
 0x2a7   :  { %v3017_v3 = vadd.f32 %v4549_v23, %v2754_v60 }
 0x2a8   :  { %v3024_v36 = vadd.f32 %v3020_v11, %v3012_v53  ;;  %v3009_v18 = vmax.f32 %v3005_v50, 0.0 }
 0x2a9   :  { %v3021_v19 = vmax.f32 %v3017_v3, 0.0  ;;  %v2758_v56 = vpop.f32.mrb[36].mxu1 }
 0x2aa   :  { %v3013_v16 = vadd.f32 %v3009_v18, %v3001_v15  ;;  %v3006_v40 = vadd.f32 %v4549_v23, %v2758_v56  ;;  %v2760_v22 = vpop.f32.mrb[37].mxu1 }
 0x2ab   :  { %v3018_v24 = vadd.f32 %v4549_v23, %v2760_v22 }
 0x2ac   :  { %v3025_v26 = vadd.f32 %v3021_v19, %v3013_v16  ;;  %v3010_v8 = vmax.f32 %v3006_v40, 0.0 }
 0x2ad   :  { %v3022_v28 = vmax.f32 %v3018_v24, 0.0  ;;  %v2764_v45 = vpop.f32.mrb[38].mxu1 }
 0x2ae   :  { %v3028_v27 = vadd.f32 %v3025_v26, %v3024_v36  ;;  %v3014_v30 = vadd.f32 %v3010_v8, %v3002_v63  ;;  %v3007_v10 = vadd.f32 %v4549_v23, %v2764_v45  ;;  %v2766_v31 = vpop.f32.mrb[39].mxu1 }
 0x2af   :  { %v3019_v32 = vadd.f32 %v4549_v23, %v2766_v31 }
 0x2b0   :  { %v3029_v13 = vrot.slane %v3028_v27, 4  ;;  %v3026_v0 = vadd.f32 %v3022_v28, %v3014_v30  ;;  %v3011_v34 = vmax.f32 %v3007_v10, 0.0 }
 0x2b1   :  { %v3023_v35 = vmax.f32 %v3019_v32, 0.0 }
 0x2b2   :  { %v3030_v54 = vadd.f32 %v3029_v13, %v3028_v27  ;;  %v3015_v41 = vadd.f32 %v3011_v34, %v3003_v14 }
 0x2b4   :  { %v3031_v42 = vrot.slane %v3030_v54, 2  ;;  %v3027_v43 = vadd.f32 %v3023_v35, %v3015_v41 }
 0x2b6   :  { %v3035_v21 = vadd.f32 %v3027_v43, %v3026_v0  ;;  %v3032_v44 = vadd.f32 %v3031_v42, %v3030_v54 }
 0x2b8   :  { %v3036_v46 = vrot.slane %v3035_v21, 4  ;;  %v3033_v2 = vrot.slane %v3032_v44, 1 }
 0x2ba   :  { %v3037_v20 = vadd.f32 %v3036_v46, %v3035_v21  ;;  %v3034_v49 = vadd.f32 %v3033_v2, %v3032_v44 }
 0x2bc   :  { %v3038_v25 = vrot.slane %v3037_v20, 2  ;;  %v3042_v23 = vmul.f32 0.00390625, %v3034_v49 }
 0x2be   :  { %v3039_v47 = vadd.f32 %v3038_v25, %v3037_v20 }
 0x2c0   :  { %v3040_v48 = vrot.slane %v3039_v47, 1 }
 0x2c2   :  { %v3041_v51 = vadd.f32 %v3040_v48, %v3039_v47 }
 0x2c4   :  { %v3043_v52 = vmul.f32 0.00390625, %v3041_v51 }
 0x2c6   :  { %v3047_v38 = vsel %vm3046_vm6, %v3043_v52, %v3042_v23 }
 0x2c7   :  { %3324 = vmatmul.mubr.f32.vlgmr.msra.gmra.mrb[32].mxu0 %v3047_v38  ;;  %3049 = vst [vmem:[#allocation15] sm:$0x3] %v3047_v38 }
 0x2c8   :  { %4020 = shalt.err (!%p4017_p10)
}
 0x2c9   :  { %s4021_s29 = scalar_lea.hbm %s4699_s7, 32 }
 0x2ca   :  { %p4022_p11 = scmp.ne.s32.totalorder %s4699_s7, %s4021_s29  ;;  %p4025_p12 = scmp.lt.u32.totalorder %s4021_s29, %s4699_s7 }
 0x2cc   :  { %p4027_p13 = pnand %p4025_p12, %p4022_p11 }
 0x2ce   :  { %4030 = shalt.err (!%p4027_p13)
}
 0x2cf   :  { %3163 = dma.vmem_to_hbm [thread:$0]  %s3161_s12, 32, %s4699_s7, [#allocation16]   ;;  %v3273_v55 = vld [vmem:[#allocation11] ss:$0 sm:$0xff] }
 0x2d0   :  { %s4079_s14 = smov [#allocation14]  }
 0x2d1   :  { %s3150_s2 = sshll.u32 %s4079_s14, 4  ;;  %s3151_s2 = int_to_ptr.vmem [resolvable:$true] %s3150_s2 }
 0x2d2   :  { %s4031_s3 = scalar_lea.vmem %s3151_s2, 32  ;;  %p4036_p1 = scmp.lt.s32.totalorder %s3151_s2, %s3151_s2 }
 0x2d3   :  { %p4032_p0 = scmp.ne.s32.totalorder %s3151_s2, %s4031_s3  ;;  %p4037_p2 = scmp.lt.s32.totalorder %s4031_s3, %s4031_s3 }
 0x2d5   :  { %p4038_p3 = por %p4037_p2, %p4036_p1 }
 0x2d7   :  { %p4039_p4 = pnand %p4038_p3, %p4032_p0 }
 0x39a   :  { %v3139_v33 = vpop.f32.mrb[32].mxu0 }
 0x39b   :  { %v3140_v58 = vadd.f32 %v3273_v55, %v3139_v33  ;;  %v3325_v15 = vpop.f32.mrb[33].mxu0 }
 0x39d   :  { %3143 = vst [vmem:[#allocation14] sm:$0x3] %v3140_v58 }
 0x39e   :  { %4042 = shalt.err (!%p4039_p4)
}
 0x39f   :  { %s4043_s17 = scalar_lea.hbm %s4698_s6, 32 }
 0x3a0   :  { %p4044_p5 = scmp.ne.s32.totalorder %s4698_s6, %s4043_s17  ;;  %p4047_p6 = scmp.lt.u32.totalorder %s4043_s17, %s4698_s6 }
 0x3a2   :  { %p4049_p7 = pnand %p4047_p6, %p4044_p5 }
 0x3a4   :  { %4052 = shalt.err (!%p4049_p7)
}
 0x3a5   :  { %3153 = dma.vmem_to_hbm [thread:$0]  %s3151_s2, 32, %s4698_s6, [#allocation5]  }
 0x3a6   :  { %4061 = dma.done.wait [#allocation5], 32  }
 0x3a7   :  { %4062 = vsyncadd [#allocation5], 4294967264 }
 0x3a8   :  { %4063 = dma.done.wait [#allocation16], 32  }
 0x3a9   :  { %4064 = vsyncadd [#allocation16], 4294967264 }
 0x3aa   :  { %3170 = vsyncpa [#allocation4], 1 }
 0x3ab   :  { %3171 = vsyncpa [#allocation7], 1 }
 0x3ac   :  { %3172 = vsyncpa [#allocation10], 1 }
 0x3ad   :  { %3173 = vsyncpa [#allocation13], 1 }
 0x3ae   :  { %3174 = vsyncpa [#allocation5], 1 }
 0x3af   :  { %3175 = vsyncpa [#allocation16], 1 }

</bundles_post_ra>
